<compile_context>
chip_gen: v7x
topology: tpu7x:2x2x1
jax: 0.10.0
libtpu: 0.0.40
codegen_flags: <defaults>
</compile_context>

<pallas_src>
import functools
import math

import jax
import jax.numpy as jnp
from jax import lax
from jax.experimental import pallas as pl
from jax.experimental.pallas import tpu as pltpu


def _make_cdc_t_kernel(compute_dtype=None):
    """Returns a Pallas kernel body (theta already folded into the weights)."""

    def kernel(w_ref, x0_ref, x1_ref, x2_ref, o_ref):
        # w_ref : (C_out, 27*C_in)   folded conv weights (theta applied in wrapper)
        # x*_ref: (C_in, H+2, W+2)   padded input frames at t, t+1, t+2
        # o_ref : (C_out, H*W)       one output frame, spatial (lane-dense) last
        c_in, hp2, wp2 = x0_ref.shape
        H, W = hp2 - 2, wp2 - 2
        x_refs = (x0_ref, x1_ref, x2_ref)

        # im2col: stack the 27 shifted (C_in, H*W) windows along the contraction
        # axis -> one (27*C_in, H*W) operand so the matmul has K = 27*C_in.
        rows = []
        for dt in range(3):
            for dh in range(3):
                for dw in range(3):
                    tap = x_refs[dt][:, dh:dh + H, dw:dw + W]     # static ref slice
                    rows.append(tap.reshape(c_in, H * W))
        patches = jnp.concatenate(rows, axis=0)                   # (27*C_in, H*W)

        w = w_ref[...]
        if compute_dtype is not None:
            patches = patches.astype(compute_dtype)
            w = w.astype(compute_dtype)

        # Single MXU matmul, f32 accumulation: (C_out, 27*C_in) @ (27*C_in, H*W)
        acc = jnp.dot(w, patches, preferred_element_type=jnp.float32)
        o_ref[...] = acc.astype(o_ref.dtype)

    return kernel


def cdc_t_forward(x, weight, theta=0.6, compute_dtype=None):
    """x: (N, C_in, T, H, W) NCDHW; weight: (C_out, C_in, 3, 3, 3). Returns NCDHW."""
    N, C_in, T, H, W = x.shape
    C_out, C_in_w, kt, kh, kw = weight.shape
    assert C_in_w == C_in and (kt, kh, kw) == (3, 3, 3)

    # PyTorch branches: theta ~ 0 or temporal kernel size <= 1 -> plain conv.
    eff_theta = 0.0 if (math.fabs(theta - 0.0) < 1e-8 or kt <= 1) else theta

    # Fold the central-difference term into the center tap:
    #   conv3d(x, W) - theta * conv1x1x1(x, kd), kd = sum_{h,w}(W[:,:,0] + W[:,:,2])
    # is identical to conv3d(x, W') with W'[:, :, 1, 1, 1] -= theta * kd.
    w_eff = weight
    if eff_theta != 0.0:
        kd = weight[:, :, 0].sum(axis=(2, 3)) + weight[:, :, 2].sum(axis=(2, 3))
        w_eff = weight.at[:, :, 1, 1, 1].add(-eff_theta * kd)

    # (C_out, C_in, 3, 3, 3) -> (C_out, 27*C_in), K index =
    # ((dt*3 + dh)*3 + dw)*C_in + ci, matching the in-kernel im2col order.
    w_flat = jnp.transpose(w_eff, (0, 2, 3, 4, 1)).reshape(C_out, 27 * C_in)

    # Zero pad of 1 on T, H, W (conv padding=1); input stays channels-first.
    # TODO(synk): the pad round-trips x through HBM once before the kernel; for
    # very large inputs fold the boundary handling into the kernel instead.
    x_pad = jnp.pad(x, ((0, 0), (0, 0), (1, 1), (1, 1), (1, 1)))

    def make_x_spec(dt):
        # Block size 1 along (padded) T => block index == element index, so the
        # temporal halo is expressed directly as t + dt without overlapping blocks.
        return pl.BlockSpec((None, C_in, None, H + 2, W + 2),
                            lambda n, t: (n, 0, t + dt, 0, 0))

    out_flat = pl.pallas_call(
        _make_cdc_t_kernel(compute_dtype),
        out_shape=jax.ShapeDtypeStruct((N, T, C_out, H * W), x.dtype),
        grid=(N, T),
        in_specs=[
            pl.BlockSpec((C_out, 27 * C_in), lambda n, t: (0, 0)),
            make_x_spec(0),
            make_x_spec(1),
            make_x_spec(2),
        ],
        out_specs=pl.BlockSpec((None, None, C_out, H * W),
                               lambda n, t: (n, t, 0, 0)),
        compiler_params=pltpu.CompilerParams(
            dimension_semantics=("parallel", "parallel"),
            vmem_limit_bytes=32 * 1024 * 1024),
    )(w_flat, x_pad, x_pad, x_pad)

    # (N, T, C_out, H*W) -> (N, C_out, T, H, W)
    return jnp.transpose(out_flat, (0, 2, 1, 3)).reshape(N, C_out, T, H, W)


def cdc_t_reference(x, weight, theta=0.6):
    """Pure-JAX reference mirroring the PyTorch forward."""
    dn = lax.conv_dimension_numbers(x.shape, weight.shape,
                                    ('NCDHW', 'OIDHW', 'NCDHW'))
    out_normal = lax.conv_general_dilated(
        x, weight, window_strides=(1, 1, 1),
        padding=((1, 1), (1, 1), (1, 1)), dimension_numbers=dn)
    if math.fabs(theta - 0.0) < 1e-8 or weight.shape[2] <= 1:
        return out_normal
    kd = weight[:, :, 0].sum((2, 3)) + weight[:, :, 2].sum((2, 3))
    kd = kd[:, :, None, None, None]
    out_diff = lax.conv_general_dilated(
        x, kd, window_strides=(1, 1, 1), padding='VALID',
        dimension_numbers=dn)
    return out_normal - theta * out_diff


if __name__ == "__main__":
    # Small shapes consistent with Conv3d(in=4, out=8, k=3, pad=1, bias=False)
    N, C_in, C_out = 2, 4, 8
    T, H, W = 4, 8, 8
    theta = 0.6

    key = jax.random.PRNGKey(0)
    kx, kw = jax.random.split(key)
    x = jax.random.normal(kx, (N, C_in, T, H, W), dtype=jnp.float32)
    fan_in = C_in * 3 * 3 * 3
    weight = jax.random.normal(kw, (C_out, C_in, 3, 3, 3),
                               dtype=jnp.float32) / jnp.sqrt(fan_in)

    out = cdc_t_forward(x, weight, theta=theta)
    out = jax.block_until_ready(out)

    ref = cdc_t_reference(x, weight, theta=theta)
    assert out.shape == (N, C_out, T, H, W), out.shape
    assert jnp.allclose(out, ref, atol=1e-4, rtol=1e-4), (
        float(jnp.max(jnp.abs(out - ref))))

    print("KERNEL_OK")
</pallas_src>

<mosaic_0001>
module attributes {stable_mosaic.version = 11 : i64} {
  func.func @kernel(%arg0: i32, %arg1: i32, %arg2: memref<8x108xf32, #tpu.memory_space<vmem>>, %arg3: memref<1x4x1x10x10xf32, #tpu.memory_space<vmem>>, %arg4: memref<1x4x1x10x10xf32, #tpu.memory_space<vmem>>, %arg5: memref<1x4x1x10x10xf32, #tpu.memory_space<vmem>>, %arg6: memref<1x1x8x64xf32, #tpu.memory_space<vmem>>) attributes {dimension_semantics = [#tpu.dimension_semantics<parallel>, #tpu.dimension_semantics<parallel>], iteration_bounds = array<i64: 2, 4>, scalar_prefetch = 0 : i64, scratch_operands = 0 : i64, tpu.core_type = #tpu.core_type<tc>, window_params = [{pipeline_mode = #tpu.pipeline_mode<synchronous>, transform_indices = @transform_0, window_bounds = array<i64: 8, 108>}, {transform_indices = @transform_1, window_bounds = array<i64: 1, 4, 1, 10, 10>}, {transform_indices = @transform_2, window_bounds = array<i64: 1, 4, 1, 10, 10>}, {transform_indices = @transform_3, window_bounds = array<i64: 1, 4, 1, 10, 10>}, {transform_indices = @transform_4, window_bounds = array<i64: 1, 1, 8, 64>}]} {
    %c0 = arith.constant 0 : index
    %c0_0 = arith.constant 0 : index
    %c0_1 = arith.constant 0 : index
    %c0_2 = arith.constant 0 : index
    %c0_3 = arith.constant 0 : index
    %0 = vector.load %arg3[%c0, %c0_0, %c0_1, %c0_2, %c0_3] : memref<1x4x1x10x10xf32, #tpu.memory_space<vmem>>, vector<1x4x1x8x8xf32>
    %1 = vector.shape_cast %0 : vector<1x4x1x8x8xf32> to vector<4x8x8xf32>
    %2 = vector.shape_cast %1 : vector<4x8x8xf32> to vector<4x64xf32>
    %c0_4 = arith.constant 0 : index
    %c0_5 = arith.constant 0 : index
    %c0_6 = arith.constant 0 : index
    %c0_7 = arith.constant 0 : index
    %c1 = arith.constant 1 : index
    %3 = vector.load %arg3[%c0_4, %c0_5, %c0_6, %c0_7, %c1] : memref<1x4x1x10x10xf32, #tpu.memory_space<vmem>>, vector<1x4x1x8x8xf32>
    %4 = vector.shape_cast %3 : vector<1x4x1x8x8xf32> to vector<4x8x8xf32>
    %5 = vector.shape_cast %4 : vector<4x8x8xf32> to vector<4x64xf32>
    %c0_8 = arith.constant 0 : index
    %c0_9 = arith.constant 0 : index
    %c0_10 = arith.constant 0 : index
    %c0_11 = arith.constant 0 : index
    %c2 = arith.constant 2 : index
    %6 = vector.load %arg3[%c0_8, %c0_9, %c0_10, %c0_11, %c2] : memref<1x4x1x10x10xf32, #tpu.memory_space<vmem>>, vector<1x4x1x8x8xf32>
    %7 = vector.shape_cast %6 : vector<1x4x1x8x8xf32> to vector<4x8x8xf32>
    %8 = vector.shape_cast %7 : vector<4x8x8xf32> to vector<4x64xf32>
    %c0_12 = arith.constant 0 : index
    %c0_13 = arith.constant 0 : index
    %c0_14 = arith.constant 0 : index
    %c1_15 = arith.constant 1 : index
    %c0_16 = arith.constant 0 : index
    %9 = vector.load %arg3[%c0_12, %c0_13, %c0_14, %c1_15, %c0_16] : memref<1x4x1x10x10xf32, #tpu.memory_space<vmem>>, vector<1x4x1x8x8xf32>
    %10 = vector.shape_cast %9 : vector<1x4x1x8x8xf32> to vector<4x8x8xf32>
    %11 = vector.shape_cast %10 : vector<4x8x8xf32> to vector<4x64xf32>
    %c0_17 = arith.constant 0 : index
    %c0_18 = arith.constant 0 : index
    %c0_19 = arith.constant 0 : index
    %c1_20 = arith.constant 1 : index
    %c1_21 = arith.constant 1 : index
    %12 = vector.load %arg3[%c0_17, %c0_18, %c0_19, %c1_20, %c1_21] : memref<1x4x1x10x10xf32, #tpu.memory_space<vmem>>, vector<1x4x1x8x8xf32>
    %13 = vector.shape_cast %12 : vector<1x4x1x8x8xf32> to vector<4x8x8xf32>
    %14 = vector.shape_cast %13 : vector<4x8x8xf32> to vector<4x64xf32>
    %c0_22 = arith.constant 0 : index
    %c0_23 = arith.constant 0 : index
    %c0_24 = arith.constant 0 : index
    %c1_25 = arith.constant 1 : index
    %c2_26 = arith.constant 2 : index
    %15 = vector.load %arg3[%c0_22, %c0_23, %c0_24, %c1_25, %c2_26] : memref<1x4x1x10x10xf32, #tpu.memory_space<vmem>>, vector<1x4x1x8x8xf32>
    %16 = vector.shape_cast %15 : vector<1x4x1x8x8xf32> to vector<4x8x8xf32>
    %17 = vector.shape_cast %16 : vector<4x8x8xf32> to vector<4x64xf32>
    %c0_27 = arith.constant 0 : index
    %c0_28 = arith.constant 0 : index
    %c0_29 = arith.constant 0 : index
    %c2_30 = arith.constant 2 : index
    %c0_31 = arith.constant 0 : index
    %18 = vector.load %arg3[%c0_27, %c0_28, %c0_29, %c2_30, %c0_31] : memref<1x4x1x10x10xf32, #tpu.memory_space<vmem>>, vector<1x4x1x8x8xf32>
    %19 = vector.shape_cast %18 : vector<1x4x1x8x8xf32> to vector<4x8x8xf32>
    %20 = vector.shape_cast %19 : vector<4x8x8xf32> to vector<4x64xf32>
    %c0_32 = arith.constant 0 : index
    %c0_33 = arith.constant 0 : index
    %c0_34 = arith.constant 0 : index
    %c2_35 = arith.constant 2 : index
    %c1_36 = arith.constant 1 : index
    %21 = vector.load %arg3[%c0_32, %c0_33, %c0_34, %c2_35, %c1_36] : memref<1x4x1x10x10xf32, #tpu.memory_space<vmem>>, vector<1x4x1x8x8xf32>
    %22 = vector.shape_cast %21 : vector<1x4x1x8x8xf32> to vector<4x8x8xf32>
    %23 = vector.shape_cast %22 : vector<4x8x8xf32> to vector<4x64xf32>
    %c0_37 = arith.constant 0 : index
    %c0_38 = arith.constant 0 : index
    %c0_39 = arith.constant 0 : index
    %c2_40 = arith.constant 2 : index
    %c2_41 = arith.constant 2 : index
    %24 = vector.load %arg3[%c0_37, %c0_38, %c0_39, %c2_40, %c2_41] : memref<1x4x1x10x10xf32, #tpu.memory_space<vmem>>, vector<1x4x1x8x8xf32>
    %25 = vector.shape_cast %24 : vector<1x4x1x8x8xf32> to vector<4x8x8xf32>
    %26 = vector.shape_cast %25 : vector<4x8x8xf32> to vector<4x64xf32>
    %c0_42 = arith.constant 0 : index
    %c0_43 = arith.constant 0 : index
    %c0_44 = arith.constant 0 : index
    %c0_45 = arith.constant 0 : index
    %c0_46 = arith.constant 0 : index
    %27 = vector.load %arg4[%c0_42, %c0_43, %c0_44, %c0_45, %c0_46] : memref<1x4x1x10x10xf32, #tpu.memory_space<vmem>>, vector<1x4x1x8x8xf32>
    %28 = vector.shape_cast %27 : vector<1x4x1x8x8xf32> to vector<4x8x8xf32>
    %29 = vector.shape_cast %28 : vector<4x8x8xf32> to vector<4x64xf32>
    %c0_47 = arith.constant 0 : index
    %c0_48 = arith.constant 0 : index
    %c0_49 = arith.constant 0 : index
    %c0_50 = arith.constant 0 : index
    %c1_51 = arith.constant 1 : index
    %30 = vector.load %arg4[%c0_47, %c0_48, %c0_49, %c0_50, %c1_51] : memref<1x4x1x10x10xf32, #tpu.memory_space<vmem>>, vector<1x4x1x8x8xf32>
    %31 = vector.shape_cast %30 : vector<1x4x1x8x8xf32> to vector<4x8x8xf32>
    %32 = vector.shape_cast %31 : vector<4x8x8xf32> to vector<4x64xf32>
    %c0_52 = arith.constant 0 : index
    %c0_53 = arith.constant 0 : index
    %c0_54 = arith.constant 0 : index
    %c0_55 = arith.constant 0 : index
    %c2_56 = arith.constant 2 : index
    %33 = vector.load %arg4[%c0_52, %c0_53, %c0_54, %c0_55, %c2_56] : memref<1x4x1x10x10xf32, #tpu.memory_space<vmem>>, vector<1x4x1x8x8xf32>
    %34 = vector.shape_cast %33 : vector<1x4x1x8x8xf32> to vector<4x8x8xf32>
    %35 = vector.shape_cast %34 : vector<4x8x8xf32> to vector<4x64xf32>
    %c0_57 = arith.constant 0 : index
    %c0_58 = arith.constant 0 : index
    %c0_59 = arith.constant 0 : index
    %c1_60 = arith.constant 1 : index
    %c0_61 = arith.constant 0 : index
    %36 = vector.load %arg4[%c0_57, %c0_58, %c0_59, %c1_60, %c0_61] : memref<1x4x1x10x10xf32, #tpu.memory_space<vmem>>, vector<1x4x1x8x8xf32>
    %37 = vector.shape_cast %36 : vector<1x4x1x8x8xf32> to vector<4x8x8xf32>
    %38 = vector.shape_cast %37 : vector<4x8x8xf32> to vector<4x64xf32>
    %c0_62 = arith.constant 0 : index
    %c0_63 = arith.constant 0 : index
    %c0_64 = arith.constant 0 : index
    %c1_65 = arith.constant 1 : index
    %c1_66 = arith.constant 1 : index
    %39 = vector.load %arg4[%c0_62, %c0_63, %c0_64, %c1_65, %c1_66] : memref<1x4x1x10x10xf32, #tpu.memory_space<vmem>>, vector<1x4x1x8x8xf32>
    %40 = vector.shape_cast %39 : vector<1x4x1x8x8xf32> to vector<4x8x8xf32>
    %41 = vector.shape_cast %40 : vector<4x8x8xf32> to vector<4x64xf32>
    %c0_67 = arith.constant 0 : index
    %c0_68 = arith.constant 0 : index
    %c0_69 = arith.constant 0 : index
    %c1_70 = arith.constant 1 : index
    %c2_71 = arith.constant 2 : index
    %42 = vector.load %arg4[%c0_67, %c0_68, %c0_69, %c1_70, %c2_71] : memref<1x4x1x10x10xf32, #tpu.memory_space<vmem>>, vector<1x4x1x8x8xf32>
    %43 = vector.shape_cast %42 : vector<1x4x1x8x8xf32> to vector<4x8x8xf32>
    %44 = vector.shape_cast %43 : vector<4x8x8xf32> to vector<4x64xf32>
    %c0_72 = arith.constant 0 : index
    %c0_73 = arith.constant 0 : index
    %c0_74 = arith.constant 0 : index
    %c2_75 = arith.constant 2 : index
    %c0_76 = arith.constant 0 : index
    %45 = vector.load %arg4[%c0_72, %c0_73, %c0_74, %c2_75, %c0_76] : memref<1x4x1x10x10xf32, #tpu.memory_space<vmem>>, vector<1x4x1x8x8xf32>
    %46 = vector.shape_cast %45 : vector<1x4x1x8x8xf32> to vector<4x8x8xf32>
    %47 = vector.shape_cast %46 : vector<4x8x8xf32> to vector<4x64xf32>
    %c0_77 = arith.constant 0 : index
    %c0_78 = arith.constant 0 : index
    %c0_79 = arith.constant 0 : index
    %c2_80 = arith.constant 2 : index
    %c1_81 = arith.constant 1 : index
    %48 = vector.load %arg4[%c0_77, %c0_78, %c0_79, %c2_80, %c1_81] : memref<1x4x1x10x10xf32, #tpu.memory_space<vmem>>, vector<1x4x1x8x8xf32>
    %49 = vector.shape_cast %48 : vector<1x4x1x8x8xf32> to vector<4x8x8xf32>
    %50 = vector.shape_cast %49 : vector<4x8x8xf32> to vector<4x64xf32>
    %c0_82 = arith.constant 0 : index
    %c0_83 = arith.constant 0 : index
    %c0_84 = arith.constant 0 : index
    %c2_85 = arith.constant 2 : index
    %c2_86 = arith.constant 2 : index
    %51 = vector.load %arg4[%c0_82, %c0_83, %c0_84, %c2_85, %c2_86] : memref<1x4x1x10x10xf32, #tpu.memory_space<vmem>>, vector<1x4x1x8x8xf32>
    %52 = vector.shape_cast %51 : vector<1x4x1x8x8xf32> to vector<4x8x8xf32>
    %53 = vector.shape_cast %52 : vector<4x8x8xf32> to vector<4x64xf32>
    %c0_87 = arith.constant 0 : index
    %c0_88 = arith.constant 0 : index
    %c0_89 = arith.constant 0 : index
    %c0_90 = arith.constant 0 : index
    %c0_91 = arith.constant 0 : index
    %54 = vector.load %arg5[%c0_87, %c0_88, %c0_89, %c0_90, %c0_91] : memref<1x4x1x10x10xf32, #tpu.memory_space<vmem>>, vector<1x4x1x8x8xf32>
    %55 = vector.shape_cast %54 : vector<1x4x1x8x8xf32> to vector<4x8x8xf32>
    %56 = vector.shape_cast %55 : vector<4x8x8xf32> to vector<4x64xf32>
    %c0_92 = arith.constant 0 : index
    %c0_93 = arith.constant 0 : index
    %c0_94 = arith.constant 0 : index
    %c0_95 = arith.constant 0 : index
    %c1_96 = arith.constant 1 : index
    %57 = vector.load %arg5[%c0_92, %c0_93, %c0_94, %c0_95, %c1_96] : memref<1x4x1x10x10xf32, #tpu.memory_space<vmem>>, vector<1x4x1x8x8xf32>
    %58 = vector.shape_cast %57 : vector<1x4x1x8x8xf32> to vector<4x8x8xf32>
    %59 = vector.shape_cast %58 : vector<4x8x8xf32> to vector<4x64xf32>
    %c0_97 = arith.constant 0 : index
    %c0_98 = arith.constant 0 : index
    %c0_99 = arith.constant 0 : index
    %c0_100 = arith.constant 0 : index
    %c2_101 = arith.constant 2 : index
    %60 = vector.load %arg5[%c0_97, %c0_98, %c0_99, %c0_100, %c2_101] : memref<1x4x1x10x10xf32, #tpu.memory_space<vmem>>, vector<1x4x1x8x8xf32>
    %61 = vector.shape_cast %60 : vector<1x4x1x8x8xf32> to vector<4x8x8xf32>
    %62 = vector.shape_cast %61 : vector<4x8x8xf32> to vector<4x64xf32>
    %c0_102 = arith.constant 0 : index
    %c0_103 = arith.constant 0 : index
    %c0_104 = arith.constant 0 : index
    %c1_105 = arith.constant 1 : index
    %c0_106 = arith.constant 0 : index
    %63 = vector.load %arg5[%c0_102, %c0_103, %c0_104, %c1_105, %c0_106] : memref<1x4x1x10x10xf32, #tpu.memory_space<vmem>>, vector<1x4x1x8x8xf32>
    %64 = vector.shape_cast %63 : vector<1x4x1x8x8xf32> to vector<4x8x8xf32>
    %65 = vector.shape_cast %64 : vector<4x8x8xf32> to vector<4x64xf32>
    %c0_107 = arith.constant 0 : index
    %c0_108 = arith.constant 0 : index
    %c0_109 = arith.constant 0 : index
    %c1_110 = arith.constant 1 : index
    %c1_111 = arith.constant 1 : index
    %66 = vector.load %arg5[%c0_107, %c0_108, %c0_109, %c1_110, %c1_111] : memref<1x4x1x10x10xf32, #tpu.memory_space<vmem>>, vector<1x4x1x8x8xf32>
    %67 = vector.shape_cast %66 : vector<1x4x1x8x8xf32> to vector<4x8x8xf32>
    %68 = vector.shape_cast %67 : vector<4x8x8xf32> to vector<4x64xf32>
    %c0_112 = arith.constant 0 : index
    %c0_113 = arith.constant 0 : index
    %c0_114 = arith.constant 0 : index
    %c1_115 = arith.constant 1 : index
    %c2_116 = arith.constant 2 : index
    %69 = vector.load %arg5[%c0_112, %c0_113, %c0_114, %c1_115, %c2_116] : memref<1x4x1x10x10xf32, #tpu.memory_space<vmem>>, vector<1x4x1x8x8xf32>
    %70 = vector.shape_cast %69 : vector<1x4x1x8x8xf32> to vector<4x8x8xf32>
    %71 = vector.shape_cast %70 : vector<4x8x8xf32> to vector<4x64xf32>
    %c0_117 = arith.constant 0 : index
    %c0_118 = arith.constant 0 : index
    %c0_119 = arith.constant 0 : index
    %c2_120 = arith.constant 2 : index
    %c0_121 = arith.constant 0 : index
    %72 = vector.load %arg5[%c0_117, %c0_118, %c0_119, %c2_120, %c0_121] : memref<1x4x1x10x10xf32, #tpu.memory_space<vmem>>, vector<1x4x1x8x8xf32>
    %73 = vector.shape_cast %72 : vector<1x4x1x8x8xf32> to vector<4x8x8xf32>
    %74 = vector.shape_cast %73 : vector<4x8x8xf32> to vector<4x64xf32>
    %c0_122 = arith.constant 0 : index
    %c0_123 = arith.constant 0 : index
    %c0_124 = arith.constant 0 : index
    %c2_125 = arith.constant 2 : index
    %c1_126 = arith.constant 1 : index
    %75 = vector.load %arg5[%c0_122, %c0_123, %c0_124, %c2_125, %c1_126] : memref<1x4x1x10x10xf32, #tpu.memory_space<vmem>>, vector<1x4x1x8x8xf32>
    %76 = vector.shape_cast %75 : vector<1x4x1x8x8xf32> to vector<4x8x8xf32>
    %77 = vector.shape_cast %76 : vector<4x8x8xf32> to vector<4x64xf32>
    %c0_127 = arith.constant 0 : index
    %c0_128 = arith.constant 0 : index
    %c0_129 = arith.constant 0 : index
    %c2_130 = arith.constant 2 : index
    %c2_131 = arith.constant 2 : index
    %78 = vector.load %arg5[%c0_127, %c0_128, %c0_129, %c2_130, %c2_131] : memref<1x4x1x10x10xf32, #tpu.memory_space<vmem>>, vector<1x4x1x8x8xf32>
    %79 = vector.shape_cast %78 : vector<1x4x1x8x8xf32> to vector<4x8x8xf32>
    %80 = vector.shape_cast %79 : vector<4x8x8xf32> to vector<4x64xf32>
    %81 = tpu.concatenate %2, %5, %8, %11, %14, %17, %20, %23, %26, %29, %32, %35, %38, %41, %44, %47 in 0 : vector<4x64xf32>, vector<4x64xf32>, vector<4x64xf32>, vector<4x64xf32>, vector<4x64xf32>, vector<4x64xf32>, vector<4x64xf32>, vector<4x64xf32>, vector<4x64xf32>, vector<4x64xf32>, vector<4x64xf32>, vector<4x64xf32>, vector<4x64xf32>, vector<4x64xf32>, vector<4x64xf32>, vector<4x64xf32> -> vector<64x64xf32>
    %82 = tpu.concatenate %50, %53, %56, %59, %62, %65, %68, %71, %74, %77, %80 in 0 : vector<4x64xf32>, vector<4x64xf32>, vector<4x64xf32>, vector<4x64xf32>, vector<4x64xf32>, vector<4x64xf32>, vector<4x64xf32>, vector<4x64xf32>, vector<4x64xf32>, vector<4x64xf32>, vector<4x64xf32> -> vector<44x64xf32>
    %83 = tpu.concatenate %81, %82 in 0 : vector<64x64xf32>, vector<44x64xf32> -> vector<108x64xf32>
    %c0_132 = arith.constant 0 : index
    %c0_133 = arith.constant 0 : index
    %84 = vector.load %arg2[%c0_132, %c0_133] : memref<8x108xf32, #tpu.memory_space<vmem>>, vector<8x108xf32>
    %cst = arith.constant dense<0.000000e+00> : vector<8x64xf32>
    %85 = tpu.matmul %84, %83, %cst {dimension_numbers = #tpu.dot_dimension_numbers<[1], [0], [0], [1], [0, 0, 1, 1], [], []>} : vector<8x108xf32>, vector<108x64xf32>, vector<8x64xf32> -> vector<8x64xf32>
    %c0_134 = arith.constant 0 : index
    %c0_135 = arith.constant 0 : index
    %c0_136 = arith.constant 0 : index
    %c0_137 = arith.constant 0 : index
    %86 = vector.load %arg6[%c0_134, %c0_135, %c0_136, %c0_137] : memref<1x1x8x64xf32, #tpu.memory_space<vmem>>, vector<1x1x8x64xf32>
    %87 = vector.shape_cast %86 : vector<1x1x8x64xf32> to vector<8x64xf32>
    %88 = vector.shape_cast %85 : vector<8x64xf32> to vector<1x1x8x64xf32>
    tpu.vector_store %arg6[%c0_134, %c0_135, %c0_136, %c0_137], %88 {strides = array<i32>} : memref<1x1x8x64xf32, #tpu.memory_space<vmem>>, vector<1x1x8x64xf32>,
    return
  }
  func.func @transform_0(%arg0: i32, %arg1: i32) -> (i32, i32) {
    %c0_i32 = arith.constant 0 : i32
    %c0_i32_0 = arith.constant 0 : i32
    %c0_i32_1 = arith.constant 0 : i32
    return %c0_i32, %c0_i32_0 : i32, i32
  }
  func.func @transform_1(%arg0: i32, %arg1: i32) -> (i32, i32, i32, i32, i32) {
    %c0_i32 = arith.constant 0 : i32
    %0 = arith.addi %arg1, %c0_i32 : i32
    %c0_i32_0 = arith.constant 0 : i32
    %c0_i32_1 = arith.constant 0 : i32
    %c0_i32_2 = arith.constant 0 : i32
    %c0_i32_3 = arith.constant 0 : i32
    return %arg0, %c0_i32_0, %0, %c0_i32_1, %c0_i32_2 : i32, i32, i32, i32, i32
  }
  func.func @transform_2(%arg0: i32, %arg1: i32) -> (i32, i32, i32, i32, i32) {
    %c1_i32 = arith.constant 1 : i32
    %0 = arith.addi %arg1, %c1_i32 : i32
    %c0_i32 = arith.constant 0 : i32
    %c0_i32_0 = arith.constant 0 : i32
    %c0_i32_1 = arith.constant 0 : i32
    %c0_i32_2 = arith.constant 0 : i32
    return %arg0, %c0_i32, %0, %c0_i32_0, %c0_i32_1 : i32, i32, i32, i32, i32
  }
  func.func @transform_3(%arg0: i32, %arg1: i32) -> (i32, i32, i32, i32, i32) {
    %c2_i32 = arith.constant 2 : i32
    %0 = arith.addi %arg1, %c2_i32 : i32
    %c0_i32 = arith.constant 0 : i32
    %c0_i32_0 = arith.constant 0 : i32
    %c0_i32_1 = arith.constant 0 : i32
    %c0_i32_2 = arith.constant 0 : i32
    return %arg0, %c0_i32, %0, %c0_i32_0, %c0_i32_1 : i32, i32, i32, i32, i32
  }
  func.func @transform_4(%arg0: i32, %arg1: i32) -> (i32, i32, i32, i32) {
    %c0_i32 = arith.constant 0 : i32
    %c0_i32_0 = arith.constant 0 : i32
    %c0_i32_1 = arith.constant 0 : i32
    return %arg0, %arg1, %c0_i32, %c0_i32_0 : i32, i32, i32, i32
  }
}

</mosaic_0001>

<bundles_post_ra>
// kernel: tpu_custom_call.1
= control target key start
LH: loop header
LB: loop body
LE: loop exit
PB: predicated region body
PF: predicated region fallthrough
CT: control target
= control target key end

     0   :  { %s6764_s0 = inlined_call_operand.vmem [shape: f32[8,108], index: 0, kind: input, shape index: {}]   ;;  %s6765_s1 = inlined_call_operand.vmem [shape: f32[2,4,6,10,10], index: 1, kind: input, shape index: {}]   ;;  %s6766_s2 = inlined_call_operand.vmem [shape: f32[2,4,6,10,10], index: 2, kind: input, shape index: {}]   ;;  %s6767_s3 = inlined_call_operand.vmem [shape: f32[2,4,6,10,10], index: 3, kind: input, shape index: {}]   ;;  %s6768_s4 = inlined_call_operand.hbm [shape: f32[2,4,8,64], index: 4, kind: output, shape index: {}]  }
   0x1   :  { %6789 = sst [smem:[#allocation22_spill]] %s6764_s0 }
   0x2   :  { %6790 = sst [smem:[#allocation23_spill]] %s6768_s4 }
   0x3   :  { %9 = vsyncpa [#allocation6], 0 }
   0x4   :  { %11 = vsyncpa [#allocation6 + $0x1], 0  ;;  %s4630_s15 = smov 0   ;;  %s4632_s16 = smov 0  }
   0x5   :  { %s4634_s17 = smov 0   ;;  %s4636_s18 = smov 0  }
   0x6   :  { %s4638_s19 = smov 0   ;;  %s4640_s20 = smov 0  }
   0x7   :  { %s4642_s21 = smov 0   ;;  %s4644_s22 = smov 0  }
   0x8   :  { %s4646_s23 = smov 0   ;;  %s4648_s24 = smov 0  }
   0x9   :  { %s4650_s25 = smov 0   ;;  %s4652_s26 = smov 0  }
   0xa LB: > { %s26_s29 = sadd.s32 1, %s4579_s24  ;;  %s29_s30 = sadd.s32 1, %s4583_s25  ;;  %s4587_s26 = sphi %s4652_s26, %s17_s26   ;;  %s4583_s25 = sphi %s4650_s25, %s6849_s25   ;;  %s4579_s24 = sphi %s4648_s24, %s6848_s24   ;;  %s4575_s23 = sphi %s4646_s23, %s6847_s23   ;;  %s4571_s22 = sphi %s4644_s22, %s6846_s22   ;;  %s4567_s21 = sphi %s4642_s21, %s6845_s21   ;;  %s4563_s20 = sphi %s4640_s20, %s6844_s20   ;;  %s4559_s19 = sphi %s4638_s19, %s6843_s19   ;;  %s4555_s18 = sphi %s4636_s18, %s6842_s18   ;;  %s4551_s17 = sphi %s4634_s17, %s6841_s17   ;;  %s4547_s16 = sphi %s4632_s16, %s6840_s16   ;;  %s4543_s15 = sphi %s4630_s15, %s6839_s15  }
   0xb   : > { %p27_p0 = scmp.ge.s32.totalorder %s26_s29, 4  ;;  %s59_s5 = sadd.s32 1, %s4567_s21 }
   0xc   : > { %p66_p1 = scmp.ne.s32.totalorder %s4567_s21, %s4563_s20  ;;  %p67_p2 = scmp.eq.s32.totalorder %s4587_s26, 0 }
   0xd   : > { %s4698_s6 = scalar_select %p27_p0, 0, %s26_s29  }
   0xe   : > { %s6851_s30 = smov (!%p27_p0, %s29_s30), %s4583_s25  ;;  %p4708_p3 = por %p67_p2, %p66_p1 }
   0xf   : > { %6791 = sst [smem:[#allocation8_spill]] %s4698_s6  ;;  %s55_s7 = ssub.s32 %s4579_s24, %s4698_s6 }
  0x10   : > { %p31_p4 = scmp.ge.s32.totalorder %s6851_s30, 2  ;;  %s83_s9 = sadd.s32 1, %s4698_s6 }
  0x11   : > { %s85_s10 = ssub.s32 %s26_s29, %s83_s9  ;;  %s89_s11 = sadd.s32 1, %s4559_s19 }
  0x12   : > { %s6853_s30 = smov (%p31_p4, %s6851_s30), 0  ;;  %p96_p5 = scmp.ne.s32.totalorder %s4559_s19, %s4555_s18 }
  0x13   : > { %6793 = sst [smem:[#allocation9_spill]] %s6853_s30  ;;  %s112_s12 = sadd.s32 2, %s4579_s24 }
  0x14   : > { %s54_s13 = ssub.s32 %s4583_s25, %s6853_s30  ;;  %s113_s14 = sadd.s32 2, %s4698_s6 }
  0x15   : > { %s56_s28 = sor.u32 %s55_s7, %s54_s13  ;;  %s86_s29 = sor.u32 %s85_s10, %s54_s13 }
  0x16   : > { %p57_p6 = scmp.eq.s32.totalorder %s56_s28, 0  ;;  %p87_p7 = scmp.eq.s32.totalorder %s86_s29, 0 }
  0x17   : > { %p4724_p8 = por %p96_p5, %p67_p2  ;;  %s115_s27 = ssub.s32 %s112_s12, %s113_s14 }
  0x18   : > { %s4729_s4 = scalar_select %p57_p6, %s4567_s21, %s59_s5  }
  0x19   : > { %s4732_s0 = scalar_select %p87_p7, %s4559_s19, %s89_s11  }
  0x1a   : > { %6795 = sst [smem:[#allocation10_spill]] %s4729_s4  ;;  %s116_s30 = sor.u32 %s115_s27, %s54_s13 }
  0x1b   : > { %6796 = sst [smem:[#allocation11_spill]] %s4732_s0  ;;  %s119_s6 = sadd.s32 1, %s4551_s17 }
  0x1c   : > { %p117_p9 = scmp.eq.s32.totalorder %s116_s30, 0  ;;  %p126_p10 = scmp.ne.s32.totalorder %s4551_s17, %s4547_s16 }
  0x1d   : > { %s6797_s7 = sadd.s32 4294967295, %s4587_s26   ;;  %p163_p12 = scmp.ne.s32.totalorder %s4563_s20, %s4543_s15 }
  0x1e   : > { %p158_p11 = scmp.eq.s32.totalorder %s6797_s7, 7  ;;  %p4746_p13 = por %p126_p10, %p67_p2 }
  0x1f   : > { %s4742_s10 = scalar_select %p117_p9, %s4551_s17, %s119_s6  }
  0x20   : > { %p4753_p0 = por %p158_p11, %p66_p1  ;;  %s6800_s11 = sadd.s32 4294967294, %s4587_s26  }
  0x21   : > { %p164_p4 = scmp.eq.s32.totalorder %s6800_s11, 7  ;;  %p3812_p6 = scmp.ge.s32.totalorder %s4587_s26, 8 }
  0x23   : > { %p4759_p5 = por %p164_p4, %p163_p12  ;;  %183 = sbr.rel (%p3812_p6) target bundleno = 78 (0x4e), region = 20 }
  0x2a   : > { %186 = sbr.rel (!%p4708_p3) target bundleno = 54 (0x36), region = 24  ;;  %s188_s30 = sand.u32 (%p4708_p3), 1, %s4567_s21  }
  0x2b   : > { %s3814_s6 = sshll.u32 (%p4708_p3), %s4579_s24, 1  ;;  %s3813_s12 = sshll.u32 (%p4708_p3), %s188_s30, 6 }
  0x2c   : > { %s3918_s13 = smul.u32 (%p4708_p3), 48, %s4583_s25  ;;  %s190_s0 = scalar_lea.vmem (%p4708_p3), [#allocation2], %s3813_s12 }
  0x2e   : > { %s193_s14 = sadd.s32 (%p4708_p3), %s3918_s13, %s3814_s6 }
  0x2f   : > { %s3815_s29 = sshll.u32 (%p4708_p3), %s193_s14, 3 }
  0x30   : > { %s195_s4 = scalar_lea.vmem (%p4708_p3), %s6765_s1, %s3815_s29 }
  0x31   : > { %v237_v0 = vld [vmem:[%s195_s4] sm:$0xff]  ;;  %v239_v1 = vld [vmem:[%s195_s4 + $0x8] sm:$0xff] }
  0x32   : > { %v241_v2 = vld [vmem:[%s195_s4 + $0x60] sm:$0xff]  ;;  %238 = vst [vmem:[%s190_s0] sm:$0xff] %v237_v0  ;;  %240 = vst [vmem:[%s190_s0 + $0x8] sm:$0xff] %v239_v1  ;;  %v243_v3 = vld [vmem:[%s195_s4 + $0x68] sm:$0xff] }
  0x33   : > { %242 = vst [vmem:[%s190_s0 + $0x10] sm:$0xff] %v241_v2  ;;  %v245_v4 = vld [vmem:[%s195_s4 + $0xc0] sm:$0xff]  ;;  %v247_v5 = vld [vmem:[%s195_s4 + $0xc8] sm:$0xff]  ;;  %244 = vst [vmem:[%s190_s0 + $0x18] sm:$0xff] %v243_v3 }
  0x34   : > { %246 = vst [vmem:[%s190_s0 + $0x20] sm:$0xff] %v245_v4  ;;  %248 = vst [vmem:[%s190_s0 + $0x28] sm:$0xff] %v247_v5  ;;  %v249_v6 = vld [vmem:[%s195_s4 + $0x120] sm:$0xff]  ;;  %v251_v7 = vld [vmem:[%s195_s4 + $0x128] sm:$0xff] }
  0x35   : > { %250 = vst [vmem:[%s190_s0 + $0x30] sm:$0xff] %v249_v6  ;;  %252 = vst [vmem:[%s190_s0 + $0x38] sm:$0xff] %v251_v7 }
  0x36 PF: > { %258 = sbr.rel (!%p4724_p8) target bundleno = 66 (0x42), region = 62  ;;  %s260_s8 = sand.u32 (%p4724_p8), 1, %s4559_s19  }
  0x37   : > { %s3817_s30 = sshll.u32 (%p4724_p8), %s4579_s24, 1  ;;  %s3816_s6 = sshll.u32 (%p4724_p8), %s260_s8, 6 }
  0x38   : > { %s3715_s12 = smul.u32 (%p4724_p8), 48, %s4583_s25  ;;  %s262_s0 = scalar_lea.vmem (%p4724_p8), [#allocation3], %s3816_s6 }
  0x3a   : > { %s3716_s13 = sadd.s32 (%p4724_p8), %s3817_s30, %s3715_s12 }
  0x3b   : > { %s3818_s14 = sshll.u32 (%p4724_p8), %s3716_s13, 3 }
  0x3c   : > { %s3718_s11 = scalar_lea.vmem (%p4724_p8), %s6766_s2, %s3818_s14 }
  0x3d   : > { %v3819_v8 = vld [vmem:[%s3718_s11 + $0x10] sm:$0xff]  ;;  %v3820_v9 = vld [vmem:[%s3718_s11 + $0x18] sm:$0xff] }
  0x3e   : > { %v3821_v10 = vld [vmem:[%s3718_s11 + $0x70] sm:$0xff]  ;;  %311 = vst [vmem:[%s262_s0] sm:$0xff] %v3819_v8  ;;  %313 = vst [vmem:[%s262_s0 + $0x8] sm:$0xff] %v3820_v9  ;;  %v3822_v11 = vld [vmem:[%s3718_s11 + $0x78] sm:$0xff] }
  0x3f   : > { %315 = vst [vmem:[%s262_s0 + $0x10] sm:$0xff] %v3821_v10  ;;  %v3823_v12 = vld [vmem:[%s3718_s11 + $0xd0] sm:$0xff]  ;;  %v3824_v13 = vld [vmem:[%s3718_s11 + $0xd8] sm:$0xff]  ;;  %317 = vst [vmem:[%s262_s0 + $0x18] sm:$0xff] %v3822_v11 }
  0x40   : > { %319 = vst [vmem:[%s262_s0 + $0x20] sm:$0xff] %v3823_v12  ;;  %321 = vst [vmem:[%s262_s0 + $0x28] sm:$0xff] %v3824_v13  ;;  %v3825_v14 = vld [vmem:[%s3718_s11 + $0x130] sm:$0xff]  ;;  %v3826_v15 = vld [vmem:[%s3718_s11 + $0x138] sm:$0xff] }
  0x41   : > { %323 = vst [vmem:[%s262_s0 + $0x30] sm:$0xff] %v3825_v14  ;;  %325 = vst [vmem:[%s262_s0 + $0x38] sm:$0xff] %v3826_v15 }
  0x42 PF: > { %331 = sbr.rel (!%p4746_p13) target bundleno = 78 (0x4e), region = 100  ;;  %s333_s4 = sand.u32 (%p4746_p13), 1, %s4551_s17  }
  0x43   : > { %s3828_s9 = sshll.u32 (%p4746_p13), %s4579_s24, 1  ;;  %s3827_s8 = sshll.u32 (%p4746_p13), %s333_s4, 6 }
  0x44   : > { %s3723_s30 = smul.u32 (%p4746_p13), 48, %s4583_s25  ;;  %s335_s7 = scalar_lea.vmem (%p4746_p13), [#allocation4], %s3827_s8 }
  0x46   : > { %s3724_s6 = sadd.s32 (%p4746_p13), %s3828_s9, %s3723_s30 }
  0x47   : > { %s3829_s12 = sshll.u32 (%p4746_p13), %s3724_s6, 3 }
  0x48   : > { %s3726_s29 = scalar_lea.vmem (%p4746_p13), %s6767_s3, %s3829_s12 }
  0x49   : > { %v3830_v16 = vld [vmem:[%s3726_s29 + $0x20] sm:$0xff]  ;;  %v3831_v17 = vld [vmem:[%s3726_s29 + $0x28] sm:$0xff] }
  0x4a   : > { %v3832_v18 = vld [vmem:[%s3726_s29 + $0x80] sm:$0xff]  ;;  %384 = vst [vmem:[%s335_s7] sm:$0xff] %v3830_v16  ;;  %386 = vst [vmem:[%s335_s7 + $0x8] sm:$0xff] %v3831_v17  ;;  %v3833_v19 = vld [vmem:[%s3726_s29 + $0x88] sm:$0xff] }
  0x4b   : > { %388 = vst [vmem:[%s335_s7 + $0x10] sm:$0xff] %v3832_v18  ;;  %v3834_v20 = vld [vmem:[%s3726_s29 + $0xe0] sm:$0xff]  ;;  %v3835_v21 = vld [vmem:[%s3726_s29 + $0xe8] sm:$0xff]  ;;  %390 = vst [vmem:[%s335_s7 + $0x18] sm:$0xff] %v3833_v19 }
  0x4c   : > { %392 = vst [vmem:[%s335_s7 + $0x20] sm:$0xff] %v3834_v20  ;;  %394 = vst [vmem:[%s335_s7 + $0x28] sm:$0xff] %v3835_v21  ;;  %v3836_v22 = vld [vmem:[%s3726_s29 + $0x140] sm:$0xff]  ;;  %v3837_v23 = vld [vmem:[%s3726_s29 + $0x148] sm:$0xff] }
  0x4d   : > { %396 = vst [vmem:[%s335_s7 + $0x30] sm:$0xff] %v3836_v22  ;;  %398 = vst [vmem:[%s335_s7 + $0x38] sm:$0xff] %v3837_v23 }
  0x4e PF: > { %p3838_p1 = scmp.ge.s32.totalorder %s4587_s26, 1  ;;  %p403_p2 = scmp.lt.s32.totalorder %s4587_s26, 9 }
  0x50   : > { %p404_p3 = pnand %p3838_p1, %p403_p2 }
  0x52   : > { %407 = sbr.rel (%p404_p3) target bundleno = 949 (0x3b5), region = 138 }
  0x59   : > { %s4791_s28 = sand.u32 1, %s4563_s20   ;;  %v468_v24 = vlaneseq  ;;  %v4589_v25 = vmov 1983009808   ;;  %v4590_v27 = vmov 1934713408   ;;  %s4591_s4 = smov 127  }
  0x5a   : > { %s3839_s11 = sshll.u32 %s4791_s28, 6  ;;  %v466_v26 = vunpack.c.l.s4 %v4589_v25  ;;  %v498_v28 = vunpack.c.l.s4 %v4590_v27  ;;  %s4592_s9 = smov 32   ;;  %v6774_v62 = vmov 0.0   ;;  %vm559_vm0 = vcmask 64512  }
  0x5b   : > { %v469_v29 = vshrl.u32 %v468_v24, 7  ;;  %s4794_s0 = scalar_lea.vmem [#allocation2], %s3839_s11  ;;  %s4593_s8 = smov 16   ;;  %vm561_vm1 = vcmask 130048   ;;  %vm563_vm2 = vcmask 195584   ;;  %vm565_vm3 = vcmask 261120  }
  0x5c   : > { %v4797_v30 = vld [vmem:[%s4794_s0] sm:$0xff]  ;;  %v460_v32 = vld [vmem:[%s4794_s0 + $0x10] sm:$0xff]  ;;  %v467_v33 = vunpack.c.0.s8 %v466_v26  ;;  %v499_v34 = vunpack.c.0.s8 %v498_v28  ;;  %s4595_s30 = smov 48   ;;  %s4596_s6 = smov 8   ;;  %vm567_vm4 = vcmask 326656   ;;  %vm569_vm5 = vcmask 392192  }
  0x5d   : > { %v4800_v31 = vld [vmem:[%s4794_s0 + $0x20] sm:$0xff]  ;;  %577 = vrot.lane.b32.xlu1 %v4797_v30, %s4591_s4  ;;  %v462_v36 = vld [vmem:[%s4794_s0 + $0x30] sm:$0xff]  ;;  %s4597_s12 = smov 24   ;;  %s4598_s13 = smov 40   ;;  %vm571_vm6 = vcmask 457728   ;;  %vm3559_vm7 = vcmask 1043456  }
  0x5e   : > { %v464_v35 = vcombine.high %v4797_v30, %v4800_v31  ;;  %v463_v37 = vcombine.low %v4797_v30, %v4800_v31  ;;  %v4811_v38 = vld [vmem:[%s4794_s0 + $0x1] sm:$0xff]  ;;  %v4813_v39 = vsub.s32 %v467_v33, %v469_v29  ;;  %v480_v40 = vcombine.high %v460_v32, %v462_v36  ;;  %v808_v44 = vld [vmem:[%s4794_s0 + $0x11] sm:$0xff]  ;;  %s6772_s14 = smov 56   ;;  %s4600_s29 = smov 126  }
  0x5f   : > { %v4815_v41 = vsub.s32 %v499_v34, %v469_v29  ;;  %v479_v42 = vcombine.low %v460_v32, %v462_v36  ;;  %v4818_v43 = vld [vmem:[%s4794_s0 + $0x21] sm:$0xff]  ;;  %v810_v45 = vld [vmem:[%s4794_s0 + $0x31] sm:$0xff]  ;;  %s417_s7 = sand.u32 1, %s4555_s18   ;;  %s6807_s18 = smov 56   ;;  %vm4602_vm8 = vmmov 0   ;;  %vm4603_vm9 = vmmov 1  }
  0x60   : > { %v811_v46 = vcombine.low %v4811_v38, %v4818_v43  ;;  %v812_v47 = vcombine.high %v4811_v38, %v4818_v43  ;;  %v827_v48 = vcombine.low %v808_v44, %v810_v45  ;;  %v828_v49 = vcombine.high %v808_v44, %v810_v45  ;;  %v4887_v11 = vld [vmem:[%s4794_s0 + $0x2] sm:$0xff]  ;;  %s3840_s11 = sshll.u32 %s417_s7, 6  ;;  %v4902_v13 = vld [vmem:[%s4794_s0 + $0x12] sm:$0xff]  ;;  %vm3916_vm10 = vmpackc.low %vm3559_vm7, %vm4603_vm9 }
  0x61   : > { %v478_v50 = vrot.slane %v464_v35, %v4813_v39  ;;  %v494_v51 = vrot.slane %v480_v40, %v4813_v39  ;;  %v471_v52 = vrot.slane %v463_v37, %v4813_v39  ;;  %v487_v53 = vrot.slane %v479_v42, %v4813_v39  ;;  %v4895_v12 = vld [vmem:[%s4794_s0 + $0x22] sm:$0xff]  ;;  %v4914_v15 = vld [vmem:[%s4794_s0 + $0x32] sm:$0xff]  ;;  %s424_s0 = sand.u32 1, %s4547_s16  }
  0x62   : > { %v4851_v3 = vrot.slane %v811_v46, %v4813_v39  ;;  %v4854_v4 = vrot.slane %v812_v47, %v4813_v39  ;;  %v4857_v5 = vrot.slane %v827_v48, %v4813_v39  ;;  %v4860_v6 = vrot.slane %v828_v49, %v4813_v39  ;;  %s3841_s7 = sshll.u32 %s424_s0, 6  ;;  %s6834_s0 = sld [smem:[#allocation23_spill]] }
  0x63   : > { %v511_v54 = vcombine.low %v478_v50, %v494_v51  ;;  %v496_v55 = vcombine.high %v471_v52, %v487_v53  ;;  %v495_v56 = vcombine.low %v471_v52, %v487_v53  ;;  %v512_v57 = vcombine.high %v478_v50, %v494_v51  ;;  %s5343_s16 = scalar_lea.vmem [#allocation4], %s3841_s7 }
  0x64   : > { %v844_v7 = vcombine.high %v4851_v3, %v4857_v5  ;;  %v859_v8 = vcombine.low %v4854_v4, %v4860_v6  ;;  %v860_v9 = vcombine.high %v4854_v4, %v4860_v6  ;;  %vm3589_vm11 = vcmask 883712  }
  0x65   : > { %v519_v58 = vrot.slane %v511_v54, %v4815_v41  ;;  %v510_v59 = vrot.slane %v496_v55, %v4815_v41  ;;  %v4833_v60 = vrot.slane %v495_v56, %v4815_v41  ;;  %v526_v61 = vrot.slane %v512_v57, %v4815_v41 }
  0x66   : > { %vm3666_vm12 = vcmask 523264  }
  0x67   : > { %544 = vrot.lane.b32.xlu1 %v519_v58, %s4592_s9  ;;  %536 = vrot.lane.b32.xlu0 %v510_v59, %s4593_s8  ;;  %v527_v63 = vcombine.high %v4833_v60, %v6774_v62  ;;  %v528_v0 = vcombine.high %v510_v59, %v6774_v62  ;;  %v529_v1 = vcombine.high %v519_v58, %v6774_v62 }
  0x68   : > { %v530_v2 = vcombine.high %v526_v61, %v6774_v62 }
  0x6b   : > { %552 = vrot.lane.b32.xlu1 %v526_v61, %s4595_s30  ;;  %532 = vrot.lane.b32.xlu0 %v527_v63, %s4596_s6 }
  0x6f   : > { %540 = vrot.lane.b32.xlu1 %v528_v0, %s4597_s12  ;;  %548 = vrot.lane.b32.xlu0 %v529_v1, %s4598_s13  ;;  %v4981_v1 = vrot.slane %v844_v7, %v4815_v41  ;;  %v4997_v7 = vrot.slane %v859_v8, %v4815_v41 }
  0x73   : > { %581 = vrot.lane.b32.xlu1 %v4800_v31, %s4591_s4  ;;  %556 = vrot.lane.b32.xlu0 %v530_v2, %s6772_s14  ;;  %s4904_s14 = scalar_lea.vmem [#allocation3], %s3840_s11  ;;  %v1152_v2 = vcombine.low %v4887_v11, %v4895_v12 }
  0x74   : > { %v4907_v14 = vld [vmem:[%s4904_s14 + $0x10] sm:$0xff]  ;;  %v4924_v17 = vld [vmem:[%s4904_s14] sm:$0xff] }
  0x75   : > { %v4917_v16 = vld [vmem:[%s4904_s14 + $0x30] sm:$0xff]  ;;  %v4929_v18 = vld [vmem:[%s4904_s14 + $0x20] sm:$0xff] }
  0x77   : > { %579 = vrot.lane.b32.xlu0 %v460_v32, %s4591_s4  ;;  %694 = vrot.lane.b32.xlu1 %v460_v32, %s4600_s29 }
  0x7b   : > { %583 = vrot.lane.b32.xlu0 %v462_v36, %s4591_s4  ;;  %698 = vrot.lane.b32.xlu1 %v462_v36, %s4600_s29 }
  0x7f   : > { %692 = vrot.lane.b32.xlu0 %v4797_v30, %s4600_s29  ;;  %918 = vrot.lane.b32.xlu1 %v4811_v38, %s4591_s4 }
  0x83   : > { %696 = vrot.lane.b32.xlu0 %v4800_v31, %s4600_s29  ;;  %922 = vrot.lane.b32.xlu1 %v4818_v43, %s4591_s4 }
  0x87   : > { %920 = vrot.lane.b32.xlu0 %v808_v44, %s4591_s4  ;;  %1035 = vrot.lane.b32.xlu1 %v808_v44, %s4600_s29 }
  0x8b   : > { %924 = vrot.lane.b32.xlu0 %v810_v45, %s4591_s4  ;;  %1039 = vrot.lane.b32.xlu1 %v810_v45, %s4600_s29 }
  0x8f   : > { %1033 = vrot.lane.b32.xlu0 %v4811_v38, %s4600_s29  ;;  %1259 = vrot.lane.b32.xlu1 %v4887_v11, %s4591_s4 }
  0x93   : > { %1037 = vrot.lane.b32.xlu0 %v4818_v43, %s4600_s29  ;;  %1263 = vrot.lane.b32.xlu1 %v4895_v12, %s4591_s4 }
  0x97   : > { %1261 = vrot.lane.b32.xlu0 %v4902_v13, %s4591_s4  ;;  %1717 = vrot.lane.b32.xlu1 %v4907_v14, %s4600_s29 }
  0x9b   : > { %1265 = vrot.lane.b32.xlu0 %v4914_v15, %s4591_s4  ;;  %1721 = vrot.lane.b32.xlu1 %v4917_v16, %s4600_s29 }
  0x9f   : > { %1715 = vrot.lane.b32.xlu0 %v4924_v17, %s4600_s29 }
  0xa3   : > { %1719 = vrot.lane.b32.xlu0 %v4929_v18, %s4600_s29 }
  0xcf   : > { %v578_v19 = vpop.permute.xlu1 %577 }
  0xd9   : > { %v4933_v20 = vpop.permute.xlu1 %544  ;;  %v4935_v21 = vpop.permute.xlu0 %536 }
  0xdd   : > { %v4937_v22 = vpop.permute.xlu1 %552  ;;  %v4939_v23 = vpop.permute.xlu0 %532 }
  0xde   : > { %6802 = vst [vmem:[#allocation12_spill] sm:$0xff] %v4937_v22 }
  0xe1   : > { %v4941_v24 = vpop.permute.xlu1 %540  ;;  %v4943_v25 = vpop.permute.xlu0 %548 }
  0xe2   : > { %6803 = vst [vmem:[#allocation13_spill] sm:$0xff] %v4943_v25 }
  0xe5   : > { %v582_v26 = vpop.permute.xlu1 %581  ;;  %v4945_v27 = vpop.permute.xlu0 %556 }
  0xe6   : > { %6804 = vst [vmem:[#allocation14_spill] sm:$0xff] %v4945_v27  ;;  %v589_v30 = vcombine.low %v578_v19, %v582_v26  ;;  %v590_v33 = vcombine.high %v578_v19, %v582_v26 }
  0xe8   : > { %v4948_v36 = vrot.slane %v589_v30, %v4813_v39  ;;  %v604_v43 = vrot.slane %v590_v33, %v4813_v39 }
  0xe9   : > { %v580_v28 = vpop.permute.xlu0 %579  ;;  %v695_v29 = vpop.permute.xlu1 %694 }
  0xed   : > { %v584_v31 = vpop.permute.xlu0 %583  ;;  %v699_v32 = vpop.permute.xlu1 %698 }
  0xee   : > { %v605_v34 = vcombine.low %v580_v28, %v584_v31  ;;  %v606_v35 = vcombine.high %v580_v28, %v584_v31  ;;  %v720_v45 = vcombine.low %v695_v29, %v699_v32  ;;  %v721_v46 = vcombine.high %v695_v29, %v699_v32 }
  0xef   : > { %v1168_v29 = vcombine.low %v4902_v13, %v4914_v15 }
  0xf0   : > { %v4951_v37 = vrot.slane %v605_v34, %v4813_v39  ;;  %v620_v38 = vrot.slane %v606_v35, %v4813_v39  ;;  %v4963_v53 = vrot.slane %v720_v45, %v4813_v39  ;;  %v735_v54 = vrot.slane %v721_v46, %v4813_v39 }
  0xf1   : > { %v693_v40 = vpop.permute.xlu0 %692  ;;  %v919_v42 = vpop.permute.xlu1 %918  ;;  %v5019_v46 = vrot.slane %v1152_v2, %v4813_v39  ;;  %v1493_v2 = vcombine.low %v4924_v17, %v4929_v18 }
  0xf2   : > { %v622_v44 = vcombine.high %v4948_v36, %v4951_v37  ;;  %v637_v48 = vcombine.low %v604_v43, %v620_v38  ;;  %v638_v58 = vcombine.high %v604_v43, %v620_v38  ;;  %v1169_v43 = vcombine.high %v4902_v13, %v4914_v15 }
  0xf3   : > { %v5071_v62 = vrot.slane %v1493_v2, %v4813_v39 }
  0xf4   : > { %v4958_v47 = vrot.slane %v622_v44, %v4815_v41  ;;  %v4971_v57 = vrot.slane %v637_v48, %v4815_v41  ;;  %v4986_v26 = vrot.slane %v638_v58, %v4815_v41  ;;  %v5022_v48 = vrot.slane %v1168_v29, %v4813_v39 }
  0xf5   : > { %v697_v49 = vpop.permute.xlu0 %696  ;;  %v923_v50 = vpop.permute.xlu1 %922  ;;  %v1509_v29 = vcombine.low %v4907_v14, %v4917_v16 }
  0xf6   : > { %v704_v51 = vcombine.low %v693_v40, %v697_v49  ;;  %v705_v52 = vcombine.high %v693_v40, %v697_v49  ;;  %662 = vrot.lane.b32.xlu0 %v4958_v47, %s4593_s8  ;;  %v930_v19 = vcombine.low %v919_v42, %v923_v50  ;;  %v931_v31 = vcombine.high %v919_v42, %v923_v50 }
  0xf7   : > { %v1153_v42 = vcombine.high %v4887_v11, %v4895_v12  ;;  %v5028_v50 = vrot.slane %v860_v9, %v4815_v41 }
  0xf8   : > { %v4967_v55 = vrot.slane %v704_v51, %v4813_v39  ;;  %v719_v56 = vrot.slane %v705_v52, %v4813_v39  ;;  %v5011_v8 = vrot.slane %v930_v19, %v4813_v39  ;;  %v945_v52 = vrot.slane %v931_v31, %v4813_v39 }
  0xf9   : > { %v921_v59 = vpop.permute.xlu0 %920  ;;  %v1036_v61 = vpop.permute.xlu1 %1035  ;;  %v1494_v19 = vcombine.high %v4924_v17, %v4929_v18 }
  0xfa   : > { %v737_v63 = vcombine.high %v4967_v55, %v4963_v53  ;;  %v752_v0 = vcombine.low %v719_v56, %v735_v54  ;;  %670 = vrot.lane.b32.xlu0 %v4971_v57, %s4592_s9  ;;  %v753_v30 = vcombine.high %v719_v56, %v735_v54 }
  0xfc   : > { %v4989_v28 = vrot.slane %v737_v63, %v4815_v41  ;;  %v5004_v40 = vrot.slane %v752_v0, %v4815_v41  ;;  %v5036_v58 = vrot.slane %v753_v30, %v4815_v41  ;;  %v1183_v63 = vrot.slane %v1169_v43, %v4813_v39 }
  0xfd   : > { %v925_v32 = vpop.permute.xlu0 %924  ;;  %v1040_v33 = vpop.permute.xlu1 %1039 }
  0xfe   : > { %v946_v34 = vcombine.low %v921_v59, %v925_v32  ;;  %v947_v35 = vcombine.high %v921_v59, %v925_v32  ;;  %678 = vrot.lane.b32.xlu0 %v4986_v26, %s4595_s30  ;;  %v4037_v38 = vpack.i.bf16 %v4981_v1, %v4989_v28  ;;  %v4042_v54 = vpack.i.bf16 %v4997_v7, %v5004_v40 }
  0xff   : > { %v1167_v59 = vrot.slane %v1153_v42, %v4813_v39  ;;  %v1061_v0 = vcombine.low %v1036_v61, %v1040_v33  ;;  %v1062_v4 = vcombine.high %v1036_v61, %v1040_v33  ;;  %v4047_v61 = vpack.i.bf16 %v5028_v50, %v5036_v58 }
 0x100   : > { %v5014_v44 = vrot.slane %v946_v34, %v4813_v39  ;;  %v961_v45 = vrot.slane %v947_v35, %v4813_v39  ;;  %4038 = vrot.lane.b32.xlu1 %v4037_v38, %s4593_s8  ;;  %v1185_v34 = vcombine.high %v5019_v46, %v5022_v48  ;;  %v1510_v35 = vcombine.high %v4907_v14, %v4917_v16 }
 0x101   : > { %v1034_v49 = vpop.permute.xlu0 %1033  ;;  %v1260_v51 = vpop.permute.xlu1 %1259  ;;  %v5059_v38 = vrot.slane %v1061_v0, %v4813_v39  ;;  %v1076_v42 = vrot.slane %v1062_v4, %v4813_v39  ;;  %v1200_v43 = vcombine.low %v1167_v59, %v1183_v63  ;;  %v5074_v0 = vrot.slane %v1509_v29, %v4813_v39 }
 0x102   : > { %v963_v56 = vcombine.high %v5011_v8, %v5014_v44  ;;  %v978_v9 = vcombine.low %v945_v52, %v961_v45 }
 0x104   : > { %4043 = vrot.lane.b32.xlu1 %v4042_v54, %s4592_s9  ;;  %v5042_v6 = vrot.slane %v963_v56, %v4815_v41  ;;  %v5068_v56 = vrot.slane %v978_v9, %v4815_v41  ;;  %v5081_v9 = vrot.slane %v1185_v34, %v4815_v41 }
 0x105   : > { %v1038_v30 = vpop.permute.xlu0 %1037  ;;  %v1264_v33 = vpop.permute.xlu1 %1263 }
 0x106   : > { %v1045_v31 = vcombine.low %v1034_v49, %v1038_v30  ;;  %v1046_v32 = vcombine.high %v1034_v49, %v1038_v30  ;;  %1003 = vrot.lane.b32.xlu0 %v5042_v6, %s4593_s8  ;;  %v979_v30 = vcombine.high %v945_v52, %v961_v45  ;;  %v1271_v4 = vcombine.low %v1260_v51, %v1264_v33 }
 0x107   : > { %v1272_v27 = vcombine.high %v1260_v51, %v1264_v33  ;;  %v1508_v45 = vrot.slane %v1494_v19, %v4813_v39  ;;  %v1524_v52 = vrot.slane %v1510_v35, %v4813_v39  ;;  %v5092_v51 = vrot.slane %v1200_v43, %v4815_v41 }
 0x108   : > { %v5063_v49 = vrot.slane %v1045_v31, %v4813_v39  ;;  %v1060_v54 = vrot.slane %v1046_v32, %v4813_v39  ;;  %4048 = vrot.lane.b32.xlu1 %v4047_v61, %s4595_s30  ;;  %v5086_v2 = vrot.slane %v979_v30, %v4815_v41  ;;  %v1201_v32 = vcombine.high %v1167_v59, %v1183_v63 }
 0x109   : > { %v1262_v10 = vpop.permute.xlu0 %1261  ;;  %v5095_v33 = vrot.slane %v1271_v4, %v4813_v39  ;;  %v1286_v34 = vrot.slane %v1272_v27, %v4813_v39  ;;  %v1526_v19 = vcombine.high %v5071_v62, %v5074_v0 }
 0x10a   : > { %v1078_v31 = vcombine.high %v5063_v49, %v5059_v38  ;;  %v1093_v22 = vcombine.low %v1060_v54, %v1076_v42  ;;  %1011 = vrot.lane.b32.xlu0 %v5068_v56, %s4592_s9  ;;  %v1094_v61 = vcombine.high %v1060_v54, %v1076_v42  ;;  %v1541_v42 = vcombine.low %v1508_v45, %v1524_v52 }
 0x10b   : > { %v5118_v54 = vrot.slane %v1526_v19, %v4815_v41 }
 0x10c   : > { %v5089_v29 = vrot.slane %v1078_v31, %v4815_v41  ;;  %v5105_v59 = vrot.slane %v1093_v22, %v4815_v41 }
 0x10d   : > { %v1266_v25 = vpop.permute.xlu0 %1265 }
 0x10e   : > { %v1287_v35 = vcombine.low %v1262_v10, %v1266_v25  ;;  %v1288_v30 = vcombine.high %v1262_v10, %v1266_v25  ;;  %1019 = vrot.lane.b32.xlu0 %v5086_v2, %s4595_s30  ;;  %v4052_v43 = vpack.i.bf16 %v5081_v9, %v5089_v29  ;;  %v621_v10 = vcombine.low %v4948_v36, %v4951_v37 }
 0x10f   : > { %v5115_v25 = vrot.slane %v1201_v32, %v4815_v41  ;;  %v4057_v31 = vpack.i.bf16 %v5092_v51, %v5105_v59  ;;  %v5135_v32 = vrot.slane %v1541_v42, %v4815_v41 }
 0x110   : > { %v5108_v63 = vrot.slane %v1287_v35, %v4813_v39  ;;  %v1302_v27 = vrot.slane %v1288_v30, %v4813_v39  ;;  %4053 = vrot.lane.b32.xlu1 %v4052_v43, %s4593_s8  ;;  %v5125_v35 = vrot.slane %v1094_v61, %v4815_v41  ;;  %v5138_v19 = vrot.slane %v621_v10, %v4815_v41 }
 0x111   : > { %v1542_v30 = vcombine.high %v1508_v45, %v1524_v52  ;;  %v736_v43 = vcombine.low %v4967_v55, %v4963_v53  ;;  %v6805_v45 = vcombine.low %v4851_v3, %v4857_v5  ;;  %v6806_v53 = vmov 0.0  }
 0x112   : > { %v1304_v22 = vcombine.high %v5095_v33, %v5108_v63  ;;  %v1319_v4 = vcombine.low %v1286_v34, %v1302_v27  ;;  %v1320_v61 = vcombine.high %v1286_v34, %v1302_v27  ;;  %v653_v55 = vcombine.high %v5138_v19, %v6806_v53  ;;  %3893 = vmatprep.mubr.msk.f32.mxu0 %vm4602_vm8, %v6806_v53 }
 0x113   : > { %v5154_v52 = vrot.slane %v6805_v45, %v4815_v41  ;;  %v5162_v27 = vrot.slane %v1542_v30, %v4815_v41  ;;  %v5165_v10 = vrot.slane %v736_v43, %v4815_v41  ;;  %v654_v3 = vcombine.high %v4958_v47, %v6806_v53 }
 0x114   : > { %4058 = vrot.lane.b32.xlu1 %v4057_v31, %s4592_s9  ;;  %v5129_v36 = vrot.slane %v1304_v22, %v4815_v41  ;;  %v5132_v37 = vrot.slane %v1319_v4, %v4815_v41  ;;  %v4062_v31 = vpack.i.bf16 %v5115_v25, %v5125_v35  ;;  %v5159_v34 = vrot.slane %v1320_v61, %v4815_v41 }
 0x115   : > { %v768_v4 = vcombine.high %v5165_v10, %v6806_v53  ;;  %v875_v30 = vcombine.high %v5154_v52, %v6806_v53  ;;  %v876_v43 = vcombine.high %v4981_v1, %v6806_v53  ;;  %v962_v61 = vcombine.low %v5011_v8, %v5014_v44 }
 0x116   : > { %v4067_v22 = vpack.i.bf16 %v5118_v54, %v5129_v36  ;;  %v4072_v42 = vpack.i.bf16 %v5135_v32, %v5132_v37  ;;  %v4077_v5 = vpack.i.bf16 %v5162_v27, %v5159_v34  ;;  %v655_v47 = vcombine.high %v4971_v57, %v6806_v53 }
 0x117   : > { %v877_v1 = vcombine.high %v4997_v7, %v6806_v53  ;;  %v1184_v8 = vcombine.low %v5019_v46, %v5022_v48  ;;  %v1077_v57 = vcombine.low %v5063_v49, %v5059_v38  ;;  %v5198_v45 = vrot.slane %v962_v61, %v4815_v41 }
 0x118   : > { %4063 = vrot.lane.b32.xlu1 %v4062_v31, %s4595_s30  ;;  %4068 = vrot.lane.b32.xlu0 %v4067_v22, %s4593_s8  ;;  %v4082_v31 = vpack.i.bf16 %v875_v30, %v768_v4  ;;  %v769_v22 = vcombine.high %v4989_v28, %v6806_v53  ;;  %v770_v28 = vcombine.high %v5004_v40, %v6806_v53  ;;  %v6776_v40 = vmov 0.0|0.0  }
 0x119   : > { %v5207_v7 = vrot.slane %v1184_v8, %v4815_v41  ;;  %v994_v46 = vcombine.high %v5198_v45, %v6806_v53  ;;  %v771_v38 = vcombine.high %v5036_v58, %v6806_v53  ;;  %v5214_v49 = vrot.slane %v1077_v57, %v4815_v41  ;;  %3896 = vmatprep.subr.bf16.mxu0 %v6776_v40 }
 0x11a   : > { %v4087_v44 = vpack.i.bf16 %v876_v43, %v769_v22  ;;  %v4092_v48 = vpack.i.bf16 %v877_v1, %v770_v28  ;;  %v995_v58 = vcombine.high %v5042_v6, %v6806_v53  ;;  %v1217_v30 = vcombine.high %v5081_v9, %v6806_v53 }
 0x11b   : > { %v1109_v4 = vcombine.high %v5214_v49, %v6806_v53  ;;  %v1110_v6 = vcombine.high %v5089_v29, %v6806_v53  ;;  %v1218_v9 = vcombine.high %v5092_v51, %v6806_v53  ;;  %v1111_v29 = vcombine.high %v5105_v59, %v6806_v53 }
 0x11c   : > { %658 = vrot.lane.b32.xlu1 %v653_v55, %s4596_s6  ;;  %4073 = vrot.lane.b32.xlu0 %v4072_v42, %s4592_s9  ;;  %v656_v42 = vcombine.high %v4986_v26, %v6806_v53  ;;  %v878_v26 = vcombine.high %v5028_v50, %v6806_v53  ;;  %v1216_v50 = vcombine.high %v5207_v7, %v6806_v53 }
 0x11d   : > { %v1525_v55 = vcombine.low %v5071_v62, %v5074_v0  ;;  %v996_v62 = vcombine.high %v5068_v56, %v6806_v53  ;;  %v997_v56 = vcombine.high %v5086_v2, %v6806_v53  ;;  %v4107_v61 = vpack.i.bf16 %v1217_v30, %v1110_v6  ;;  %v5396_v30 = vld [vmem:[%s5343_s16 + $0x21] sm:$0xff]  ;;  %v5407_v6 = vld [vmem:[%s5343_s16 + $0x11] sm:$0xff] }
 0x11e   : > { %v4102_v0 = vpack.i.bf16 %v1216_v50, %v1109_v4  ;;  %v1219_v51 = vcombine.high %v5115_v25, %v6806_v53  ;;  %v4112_v22 = vpack.i.bf16 %v1218_v9, %v1111_v29  ;;  %v1112_v2 = vcombine.high %v5125_v35, %v6806_v53 }
 0x11f   : > { %v5234_v43 = vrot.slane %v1525_v55, %v4815_v41  ;;  %v1336_v59 = vcombine.high %v5129_v36, %v6806_v53  ;;  %v1337_v25 = vcombine.high %v5132_v37, %v6806_v53  ;;  %v1338_v36 = vcombine.high %v5159_v34, %v6806_v53  ;;  %v5341_v34 = vld [vmem:[%s4904_s14 + $0x12] sm:$0xff] }
 0x120   : > { %666 = vrot.lane.b32.xlu1 %v654_v3, %s4597_s12  ;;  %4078 = vrot.lane.b32.xlu0 %v4077_v5, %s4595_s30  ;;  %v1303_v3 = vcombine.low %v5095_v33, %v5108_v63  ;;  %v4097_v5 = vpack.i.bf16 %v878_v26, %v771_v38  ;;  %v4117_v1 = vpack.i.bf16 %v1219_v51, %v1112_v2  ;;  %v5355_v26 = vld [vmem:[%s4904_s14 + $0x32] sm:$0xff] }
 0x121   : > { %v1557_v63 = vcombine.high %v5234_v43, %v6806_v53  ;;  %v1560_v57 = vcombine.high %v5162_v27, %v6806_v53  ;;  %v5346_v27 = vld [vmem:[%s5343_s16] sm:$0xff]  ;;  %v5367_v38 = vld [vmem:[%s5343_s16 + $0x10] sm:$0xff] }
 0x122   : > { %v5241_v33 = vrot.slane %v1303_v3, %v4815_v41  ;;  %v5376_v55 = vld [vmem:[%s5343_s16 + $0x30] sm:$0xff] }
 0x123   : > { %v4137_v37 = vpack.i.bf16 %v1560_v57, %v1338_v36 }
 0x124   : > { %674 = vrot.lane.b32.xlu1 %v655_v47, %s4598_s13  ;;  %4083 = vrot.lane.b32.xlu0 %v4082_v31, %s4596_s6  ;;  %v1335_v47 = vcombine.high %v5241_v33, %v6806_v53  ;;  %v1558_v31 = vcombine.high %v5118_v54, %v6806_v53  ;;  %v1559_v54 = vcombine.high %v5135_v32, %v6806_v53  ;;  %v5334_v32 = vpop.permute.xlu1 %1717 }
 0x126   : > { %v4127_v8 = vpack.i.bf16 %v1558_v31, %v1336_v59  ;;  %v4132_v35 = vpack.i.bf16 %v1559_v54, %v1337_v25  ;;  %v560_v54 = vsel %vm559_vm0, %v4833_v60, %v4939_v23 }
 0x127   : > { %v562_v60 = vsel %vm561_vm1, %v560_v54, %v4935_v21 }
 0x128   : > { %682 = vrot.lane.b32.xlu1 %v656_v42, %s6807_s18  ;;  %4088 = vrot.lane.b32.xlu0 %v4087_v44, %s4597_s12  ;;  %v4122_v42 = vpack.i.bf16 %v1557_v63, %v1335_v47  ;;  %v5350_v28 = vpop.permute.xlu1 %1721  ;;  %v5416_v63 = vld [vmem:[%s5343_s16 + $0x31] sm:$0xff] }
 0x12c   : > { %999 = vrot.lane.b32.xlu1 %v994_v46, %s4596_s6  ;;  %4093 = vrot.lane.b32.xlu0 %v4092_v48, %s4598_s13  ;;  %v5358_v46 = vld [vmem:[%s5343_s16 + $0x20] sm:$0xff] }
 0x130   : > { %1007 = vrot.lane.b32.xlu1 %v995_v58, %s4597_s12  ;;  %4098 = vrot.lane.b32.xlu0 %v4097_v5, %s6807_s18  ;;  %v5387_v5 = vld [vmem:[%s5343_s16 + $0x1] sm:$0xff] }
 0x134   : > { %1015 = vrot.lane.b32.xlu1 %v996_v62, %s4598_s13  ;;  %4103 = vrot.lane.b32.xlu0 %v4102_v0, %s4596_s6 }
 0x138   : > { %1023 = vrot.lane.b32.xlu1 %v997_v56, %s6807_s18  ;;  %4108 = vrot.lane.b32.xlu0 %v4107_v61, %s4597_s12 }
 0x13c   : > { %4113 = vrot.lane.b32.xlu0 %v4112_v22, %s4598_s13  ;;  %4123 = vrot.lane.b32.xlu1 %v4122_v42, %s4596_s6  ;;  %v3194_v22 = vld [vmem:[%s5343_s16 + $0x2] sm:$0xff] }
 0x140   : > { %4118 = vrot.lane.b32.xlu0 %v4117_v1, %s6807_s18  ;;  %4128 = vrot.lane.b32.xlu1 %v4127_v8, %s4597_s12  ;;  %v3196_v1 = vld [vmem:[%s5343_s16 + $0x22] sm:$0xff] }
 0x144   : > { %4133 = vrot.lane.b32.xlu1 %v4132_v35, %s4598_s13  ;;  %1374 = vrot.lane.b32.xlu0 %v4887_v11, %s4600_s29  ;;  %v5292_v11 = vld [vmem:[%s4904_s14 + $0x1] sm:$0xff] }
 0x148   : > { %4138 = vrot.lane.b32.xlu1 %v4137_v37, %s6807_s18  ;;  %1378 = vrot.lane.b32.xlu0 %v4895_v12, %s4600_s29  ;;  %v5299_v12 = vld [vmem:[%s4904_s14 + $0x21] sm:$0xff] }
 0x14c   : > { %1376 = vrot.lane.b32.xlu1 %v4902_v13, %s4600_s29  ;;  %1600 = vrot.lane.b32.xlu0 %v4924_v17, %s4591_s4  ;;  %v5306_v13 = vld [vmem:[%s4904_s14 + $0x11] sm:$0xff] }
 0x150   : > { %1380 = vrot.lane.b32.xlu1 %v4914_v15, %s4600_s29  ;;  %1604 = vrot.lane.b32.xlu0 %v4929_v18, %s4591_s4  ;;  %v5315_v15 = vpop.permute.xlu0 %1715  ;;  %v5332_v18 = vld [vmem:[%s4904_s14 + $0x22] sm:$0xff] }
 0x154   : > { %1602 = vrot.lane.b32.xlu1 %v4907_v14, %s4591_s4  ;;  %1941 = vrot.lane.b32.xlu0 %v5292_v11, %s4591_s4  ;;  %v5313_v14 = vld [vmem:[%s4904_s14 + $0x31] sm:$0xff]  ;;  %v5327_v17 = vpop.permute.xlu0 %1719 }
 0x158   : > { %1606 = vrot.lane.b32.xlu1 %v4917_v16, %s4591_s4  ;;  %1945 = vrot.lane.b32.xlu0 %v5299_v12, %s4591_s4  ;;  %v5323_v16 = vld [vmem:[%s4904_s14 + $0x2] sm:$0xff] }
 0x15c   : > { %1943 = vrot.lane.b32.xlu1 %v5306_v13, %s4591_s4  ;;  %2056 = vrot.lane.b32.xlu0 %v5292_v11, %s4600_s29 }
 0x160   : > { %1947 = vrot.lane.b32.xlu1 %v5313_v14, %s4591_s4  ;;  %2060 = vrot.lane.b32.xlu0 %v5299_v12, %s4600_s29 }
 0x164   : > { %2058 = vrot.lane.b32.xlu1 %v5306_v13, %s4600_s29  ;;  %2397 = vrot.lane.b32.xlu0 %v5323_v16, %s4600_s29 }
 0x168   : > { %2062 = vrot.lane.b32.xlu1 %v5313_v14, %s4600_s29  ;;  %2401 = vrot.lane.b32.xlu0 %v5332_v18, %s4600_s29  ;;  %v663_v44 = vpop.permute.xlu0 %662 }
 0x16c   : > { %2399 = vrot.lane.b32.xlu1 %v5341_v34, %s4600_s29  ;;  %2623 = vrot.lane.b32.xlu0 %v5346_v27, %s4591_s4  ;;  %v5360_v48 = vpop.permute.xlu0 %670 }
 0x170   : > { %2403 = vrot.lane.b32.xlu1 %v5355_v26, %s4600_s29  ;;  %2627 = vrot.lane.b32.xlu0 %v5358_v46, %s4591_s4  ;;  %v5378_v3 = vpop.permute.xlu0 %678 }
 0x172   : > { %v5369_v50 = vpop.permute.xlu1 %4038 }
 0x173   : > { %v4041_v23 = vunpack.i.h.bf16 %v5369_v50 }
 0x174   : > { %2625 = vrot.lane.b32.xlu1 %v5367_v38, %s4591_s4  ;;  %2282 = vrot.lane.b32.xlu0 %v5323_v16, %s4591_s4 }
 0x176   : > { %v5380_v58 = vpop.permute.xlu1 %4043 }
 0x178   : > { %2629 = vrot.lane.b32.xlu1 %v5376_v55, %s4591_s4  ;;  %2286 = vrot.lane.b32.xlu0 %v5332_v18, %s4591_s4  ;;  %v5389_v4 = vpop.permute.xlu0 %1003 }
 0x17a   : > { %v5398_v62 = vpop.permute.xlu1 %4048 }
 0x17c   : > { %2284 = vrot.lane.b32.xlu1 %v5341_v34, %s4591_s4  ;;  %3079 = vrot.lane.b32.xlu0 %v5387_v5, %s4600_s29  ;;  %v5400_v0 = vpop.permute.xlu0 %1011 }
 0x180   : > { %2288 = vrot.lane.b32.xlu1 %v5355_v26, %s4591_s4  ;;  %3083 = vrot.lane.b32.xlu0 %v5396_v30, %s4600_s29  ;;  %v5418_v56 = vpop.permute.xlu0 %1019 }
 0x182   : > { %v5409_v9 = vpop.permute.xlu1 %4053 }
 0x184   : > { %3081 = vrot.lane.b32.xlu1 %v5407_v6, %s4600_s29  ;;  %2738 = vrot.lane.b32.xlu0 %v5346_v27, %s4600_s29 }
 0x186   : > { %v5420_v61 = vpop.permute.xlu1 %4058 }
 0x188   : > { %3085 = vrot.lane.b32.xlu1 %v5416_v63, %s4600_s29  ;;  %2742 = vrot.lane.b32.xlu0 %v5358_v46, %s4600_s29 }
 0x18a   : > { %v5426_v29 = vpop.permute.xlu1 %4063  ;;  %v5428_v47 = vpop.permute.xlu0 %4068 }
 0x18c   : > { %2740 = vrot.lane.b32.xlu1 %v5367_v38, %s4600_s29  ;;  %2964 = vrot.lane.b32.xlu0 %v5387_v5, %s4591_s4 }
 0x18e   : > { %v659_v51 = vpop.permute.xlu1 %658  ;;  %v5434_v31 = vpop.permute.xlu0 %4073 }
 0x18f   : > { %6808 = vst [vmem:[#allocation15_spill] sm:$0xff] %v5434_v31  ;;  %v685_v59 = vsel %vm559_vm0, %v5138_v19, %v659_v51  ;;  %v3195_v51 = vld [vmem:[%s5343_s16 + $0x12] sm:$0xff] }
 0x190   : > { %2744 = vrot.lane.b32.xlu1 %v5376_v55, %s4600_s29  ;;  %2968 = vrot.lane.b32.xlu0 %v5396_v30, %s4591_s4  ;;  %v686_v57 = vsel %vm561_vm1, %v685_v59, %v663_v44  ;;  %v564_v59 = vsel %vm563_vm2, %v562_v60, %v4941_v24  ;;  %v3197_v60 = vld [vmem:[%s5343_s16 + $0x32] sm:$0xff] }
 0x192   : > { %v667_v42 = vpop.permute.xlu1 %666  ;;  %v5441_v2 = vpop.permute.xlu0 %4078 }
 0x193   : > { %6809 = vst [vmem:[#allocation16_spill] sm:$0xff] %v5441_v2  ;;  %v687_v19 = vsel %vm563_vm2, %v686_v57, %v667_v42 }
 0x194   : > { %2966 = vrot.lane.b32.xlu1 %v5407_v6, %s4591_s4  ;;  %3305 = vrot.lane.b32.xlu0 %v3194_v22, %s4591_s4  ;;  %v688_v21 = vsel %vm565_vm3, %v687_v19, %v5360_v48 }
 0x196   : > { %v675_v8 = vpop.permute.xlu1 %674  ;;  %v4084_v25 = vpop.permute.xlu0 %4083 }
 0x197   : > { %v4086_v35 = vunpack.i.h.bf16 %v4084_v25  ;;  %v4085_v36 = vunpack.i.l.bf16 %v4084_v25 }
 0x198   : > { %2970 = vrot.lane.b32.xlu1 %v5416_v63, %s4591_s4  ;;  %3309 = vrot.lane.b32.xlu0 %v3196_v1, %s4591_s4 }
 0x199   : > { %v907_v37 = vsel %vm559_vm0, %v5154_v52, %v4086_v35  ;;  %v800_v40 = vsel %vm559_vm0, %v5165_v10, %v4085_v36  ;;  %v4040_v52 = vunpack.i.l.bf16 %v5369_v50  ;;  %v689_v35 = vsel %vm567_vm4, %v688_v21, %v675_v8 }
 0x19a   : > { %v683_v25 = vpop.permute.xlu1 %682  ;;  %v4089_v44 = vpop.permute.xlu0 %4088  ;;  %v908_v54 = vsel %vm561_vm1, %v907_v37, %v4041_v23  ;;  %v566_v10 = vsel %vm565_vm3, %v564_v59, %v4933_v20  ;;  %v4046_v36 = vunpack.i.h.bf16 %v5380_v58  ;;  %v690_v8 = vsel %vm569_vm5, %v689_v35, %v5378_v3  ;;  %v6810_v20 = vld [vmem:[#allocation13_spill] sm:$0xff] }
 0x19b   : > { %v4091_v42 = vunpack.i.h.bf16 %v4089_v44  ;;  %v4090_v57 = vunpack.i.l.bf16 %v4089_v44  ;;  %v801_v50 = vsel %vm561_vm1, %v800_v40, %v4040_v52  ;;  %v568_v40 = vsel %vm567_vm4, %v566_v10, %v6810_v20 }
 0x19c   : > { %3307 = vrot.lane.b32.xlu1 %v3195_v51, %s4591_s4  ;;  %3420 = vrot.lane.b32.xlu0 %v3194_v22, %s4600_s29  ;;  %v4045_v22 = vunpack.i.l.bf16 %v5380_v58  ;;  %v691_v59 = vsel %vm571_vm6, %v690_v8, %v683_v25  ;;  %v4051_v52 = vunpack.i.h.bf16 %v5398_v62  ;;  %v6812_v8 = vld [vmem:[#allocation14_spill] sm:$0xff] }
 0x19d   : > { %v909_v24 = vsel %vm563_vm2, %v908_v54, %v4091_v42  ;;  %v802_v19 = vsel %vm563_vm2, %v801_v50, %v4090_v57  ;;  %v4050_v50 = vunpack.i.l.bf16 %v5398_v62  ;;  %v3536_v10 = vrot.slane %v691_v59, 4 }
 0x19e   : > { %v1000_v44 = vpop.permute.xlu1 %999  ;;  %v4094_v48 = vpop.permute.xlu0 %4093  ;;  %v910_v42 = vsel %vm565_vm3, %v909_v24, %v4046_v36  ;;  %v803_v58 = vsel %vm565_vm3, %v802_v19, %v4045_v22  ;;  %v6811_v36 = vld [vmem:[#allocation12_spill] sm:$0xff] }
 0x19f   : > { %v4096_v37 = vunpack.i.h.bf16 %v4094_v48  ;;  %v4095_v23 = vunpack.i.l.bf16 %v4094_v48 }
 0x1a0   : > { %3311 = vrot.lane.b32.xlu1 %v3197_v60, %s4591_s4  ;;  %3424 = vrot.lane.b32.xlu0 %v3196_v1, %s4600_s29  ;;  %v570_v1 = vsel %vm569_vm5, %v568_v40, %v6811_v36 }
 0x1a1   : > { %v911_v57 = vsel %vm567_vm4, %v910_v42, %v4096_v37  ;;  %v804_v3 = vsel %vm567_vm4, %v803_v58, %v4095_v23  ;;  %v572_v42 = vsel %vm571_vm6, %v570_v1, %v6812_v8  ;;  %v6813_v58 = vmov 0.0|0.0  }
 0x1a2   : > { %v1008_v21 = vpop.permute.xlu1 %1007  ;;  %v4099_v54 = vpop.permute.xlu0 %4098  ;;  %v912_v25 = vsel %vm569_vm5, %v911_v57, %v4051_v52  ;;  %v805_v22 = vsel %vm569_vm5, %v804_v3, %v4050_v50  ;;  %v3560_v62 = vsel %vm3559_vm7, %v572_v42, %v3536_v10 }
 0x1a3   : > { %v4101_v35 = vunpack.i.h.bf16 %v4099_v54  ;;  %v4100_v24 = vunpack.i.l.bf16 %v4099_v54 }
 0x1a4   : > { %3422 = vrot.lane.b32.xlu1 %v3195_v51, %s4600_s29 }
 0x1a5   : > { %v913_v48 = vsel %vm571_vm6, %v912_v25, %v4101_v35  ;;  %v806_v20 = vsel %vm571_vm6, %v805_v22, %v4100_v24  ;;  %v4055_v35 = vunpack.i.l.bf16 %v5409_v9  ;;  %v4060_v22 = vunpack.i.l.bf16 %v5420_v61 }
 0x1a6   : > { %v1016_v19 = vpop.permute.xlu1 %1015  ;;  %v4104_v37 = vpop.permute.xlu0 %4103  ;;  %v3539_v23 = vrot.slane %v913_v48, 4 }
 0x1a7   : > { %v4105_v51 = vunpack.i.l.bf16 %v4104_v37  ;;  %v4106_v1 = vunpack.i.h.bf16 %v4104_v37  ;;  %v1026_v37 = vsel %vm559_vm0, %v5198_v45, %v1000_v44  ;;  %v4075_v45 = vunpack.i.l.bf16 %v5434_v31 }
 0x1a8   : > { %v3561_v40 = vsel %vm3559_vm7, %v806_v20, %v3539_v23  ;;  %3426 = vrot.lane.b32.xlu1 %v3197_v60, %s4600_s29 }
 0x1a9   : > { %v3897_v59 = vpack.c.bf16 %v3561_v40, %v3560_v62  ;;  %v1141_v54 = vsel %vm559_vm0, %v5214_v49, %v4105_v51  ;;  %v4070_v49 = vunpack.i.l.bf16 %v5428_v47  ;;  %v1248_v42 = vsel %vm559_vm0, %v5207_v7, %v4106_v1 }
 0x1aa   : > { %v5507_v57 = vpop.permute.xlu1 %1023  ;;  %v4109_v52 = vpop.permute.xlu0 %4108  ;;  %v1142_v50 = vsel %vm561_vm1, %v1141_v54, %v4055_v35  ;;  %v4056_v40 = vunpack.i.h.bf16 %v5409_v9  ;;  %v4065_v35 = vunpack.i.l.bf16 %v5426_v29  ;;  %v1027_v7 = vsel %vm561_vm1, %v1026_v37, %v5389_v4 }
 0x1ab   : > { %3898 = vmatpush3.bf16.msra.mxu0 %v3897_v59  ;;  %v4110_v3 = vunpack.i.l.bf16 %v4109_v52  ;;  %v4111_v20 = vunpack.i.h.bf16 %v4109_v52  ;;  %v1028_v1 = vsel %vm563_vm2, %v1027_v7, %v1008_v21  ;;  %v1743_v37 = vcombine.low %v5334_v32, %v5350_v28 }
 0x1ac   : > { %3899 = vmatprep.subr.bf16.mxu0 %v6813_v58  ;;  %v1249_v44 = vsel %vm561_vm1, %v1248_v42, %v4056_v40  ;;  %v4080_v21 = vunpack.i.l.bf16 %v5441_v2 }
 0x1ad   : > { %v1143_v10 = vsel %vm563_vm2, %v1142_v50, %v4110_v3 }
 0x1ae   : > { %v5513_v24 = vpop.permute.xlu1 %4123  ;;  %v4114_v36 = vpop.permute.xlu0 %4113 }
 0x1af   : > { %v4125_v60 = vunpack.i.l.bf16 %v5513_v24  ;;  %v4115_v48 = vunpack.i.l.bf16 %v4114_v36  ;;  %v4116_v50 = vunpack.i.h.bf16 %v4114_v36  ;;  %v1029_v36 = vsel %vm565_vm3, %v1028_v1, %v5400_v0 }
 0x1b1   : > { %v1367_v25 = vsel %vm559_vm0, %v5241_v33, %v4125_v60  ;;  %v1144_v33 = vsel %vm565_vm3, %v1143_v10, %v4060_v22  ;;  %v1250_v60 = vsel %vm563_vm2, %v1249_v44, %v4111_v20 }
 0x1b2   : > { %v5522_v23 = vpop.permute.xlu1 %4128  ;;  %v4119_v8 = vpop.permute.xlu0 %4118  ;;  %v1368_v51 = vsel %vm561_vm1, %v1367_v25, %v4070_v49  ;;  %v1145_v59 = vsel %vm567_vm4, %v1144_v33, %v4115_v48  ;;  %v4061_v25 = vunpack.i.h.bf16 %v5420_v61 }
 0x1b3   : > { %v4130_v62 = vunpack.i.l.bf16 %v5522_v23  ;;  %v4120_v3 = vunpack.i.l.bf16 %v4119_v8  ;;  %v1146_v48 = vsel %vm569_vm5, %v1145_v59, %v4065_v35  ;;  %v4121_v33 = vunpack.i.h.bf16 %v4119_v8 }
 0x1b4   : > { %v1251_v42 = vsel %vm565_vm3, %v1250_v60, %v4061_v25  ;;  %v1727_v59 = vcombine.low %v5315_v15, %v5327_v17 }
 0x1b5   : > { %v1369_v54 = vsel %vm563_vm2, %v1368_v51, %v4130_v62  ;;  %v1147_v4 = vsel %vm571_vm6, %v1146_v48, %v4120_v3  ;;  %v1030_v62 = vsel %vm567_vm4, %v1029_v36, %v1016_v19  ;;  %v1252_v40 = vsel %vm567_vm4, %v1251_v42, %v4116_v50 }
 0x1b6   : > { %v5539_v52 = vpop.permute.xlu1 %4133  ;;  %v1375_v9 = vpop.permute.xlu0 %1374  ;;  %v1370_v22 = vsel %vm565_vm3, %v1369_v54, %v4075_v45  ;;  %v4066_v54 = vunpack.i.h.bf16 %v5426_v29  ;;  %v3542_v3 = vrot.slane %v1147_v4, 4  ;;  %v1031_v45 = vsel %vm569_vm5, %v1030_v62, %v5418_v56 }
 0x1b7   : > { %6814 = vst [vmem:[#allocation13_spill] sm:$0xff] %v5539_v52  ;;  %v4135_v10 = vunpack.i.l.bf16 %v5539_v52  ;;  %v1032_v1 = vsel %vm571_vm6, %v1031_v45, %v5507_v57  ;;  %v1735_v29 = vrot.slane %v1727_v59, %v4813_v39  ;;  %v1751_v50 = vrot.slane %v1743_v37, %v4813_v39 }
 0x1b8   : > { %v1253_v8 = vsel %vm569_vm5, %v1252_v40, %v4066_v54  ;;  %v1728_v57 = vcombine.high %v5315_v15, %v5327_v17  ;;  %v1744_v36 = vcombine.high %v5334_v32, %v5350_v28  ;;  %v1834_v45 = vcombine.low %v5292_v11, %v5299_v12 }
 0x1b9   : > { %v1371_v49 = vsel %vm567_vm4, %v1370_v22, %v4135_v10  ;;  %v1254_v60 = vsel %vm571_vm6, %v1253_v8, %v4121_v33  ;;  %v3562_v10 = vsel %vm3559_vm7, %v1032_v1, %v3542_v3  ;;  %v1759_v42 = vcombine.low %v1735_v29, %v1751_v50 }
 0x1ba   : > { %v5555_v20 = vpop.permute.xlu1 %4138  ;;  %v1379_v61 = vpop.permute.xlu0 %1378  ;;  %v1372_v0 = vsel %vm569_vm5, %v1371_v49, %v4080_v21  ;;  %v1760_v37 = vcombine.high %v1735_v29, %v1751_v50  ;;  %v5588_v15 = vrot.slane %v1728_v57, %v4813_v39  ;;  %v5591_v17 = vrot.slane %v1744_v36, %v4813_v39 }
 0x1bb   : > { %6815 = vst [vmem:[#allocation12_spill] sm:$0xff] %v5555_v20  ;;  %v4140_v51 = vunpack.i.l.bf16 %v5555_v20  ;;  %v1386_v56 = vcombine.low %v1375_v9, %v1379_v61  ;;  %v1387_v62 = vcombine.high %v1375_v9, %v1379_v61  ;;  %v5594_v32 = vrot.slane %v1759_v42, %v4815_v41 }
 0x1bc   : > { %v2191_v29 = vcombine.low %v5341_v34, %v5355_v26 }
 0x1bd   : > { %v1373_v35 = vsel %vm571_vm6, %v1372_v0, %v4140_v51  ;;  %v1394_v40 = vrot.slane %v1386_v56, %v4813_v39  ;;  %v5597_v28 = vrot.slane %v1387_v62, %v4813_v39 }
 0x1be   : > { %v3545_v7 = vrot.slane %v1373_v35, 4  ;;  %v1377_v19 = vpop.permute.xlu1 %1376  ;;  %v5567_v44 = vpop.permute.xlu0 %1600  ;;  %v1774_v35 = vrot.slane %v1760_v37, %v4815_v41 }
 0x1c0   : > { %v3563_v25 = vsel %vm3559_vm7, %v1254_v60, %v3545_v7  ;;  %v1850_v7 = vcombine.low %v5306_v13, %v5313_v14  ;;  %v2175_v60 = vcombine.low %v5323_v16, %v5332_v18  ;;  %v1792_v57 = vcombine.high %v1774_v35, %v6806_v53 }
 0x1c1   : > { %v3900_v48 = vpack.c.bf16 %v3563_v25, %v3562_v10  ;;  %v1775_v25 = vcombine.low %v5588_v15, %v5591_v17 }
 0x1c2   : > { %v1381_v22 = vpop.permute.xlu1 %1380  ;;  %v1605_v4 = vpop.permute.xlu0 %1604 }
 0x1c3   : > { %v1402_v49 = vcombine.low %v1377_v19, %v1381_v22  ;;  %v1403_v21 = vcombine.high %v1377_v19, %v1381_v22  ;;  %3901 = vmatpush3.bf16.msra.mxu0 %v3900_v48  ;;  %v1791_v48 = vcombine.high %v5594_v32, %v6806_v53  ;;  %v1613_v36 = vcombine.high %v5567_v44, %v1605_v4 }
 0x1c4   : > { %3902 = vmatprep.subr.bf16.mxu0 %v6813_v58 }
 0x1c5   : > { %v1410_v33 = vrot.slane %v1402_v49, %v4813_v39  ;;  %v5585_v51 = vrot.slane %v1403_v21, %v4813_v39  ;;  %v1612_v49 = vcombine.low %v5567_v44, %v1605_v4  ;;  %v5641_v44 = vrot.slane %v2191_v29, %v4813_v39 }
 0x1c6   : > { %v1603_v59 = vpop.permute.xlu1 %1602  ;;  %v1942_v54 = vpop.permute.xlu0 %1941 }
 0x1c7   : > { %v1418_v3 = vcombine.low %v1394_v40, %v1410_v33  ;;  %v1419_v0 = vcombine.high %v1394_v40, %v1410_v33  ;;  %v1434_v19 = vcombine.low %v5597_v28, %v5585_v51  ;;  %v5629_v33 = vrot.slane %v1834_v45, %v4813_v39 }
 0x1c8   : > { %v5646_v45 = vrot.slane %v1612_v49, %v4813_v39 }
 0x1c9   : > { %v5600_v9 = vrot.slane %v1418_v3, %v4815_v41  ;;  %v1433_v61 = vrot.slane %v1419_v0, %v4815_v41  ;;  %v1442_v37 = vrot.slane %v1434_v19, %v4815_v41  ;;  %v5632_v3 = vrot.slane %v1850_v7, %v4813_v39 }
 0x1ca   : > { %v1607_v8 = vpop.permute.xlu1 %1606  ;;  %v1946_v1 = vpop.permute.xlu0 %1945 }
 0x1cb   : > { %v1628_v50 = vcombine.low %v1603_v59, %v1607_v8  ;;  %v4147_v10 = vpack.i.bf16 %v1433_v61, %v1774_v35  ;;  %v1450_v56 = vcombine.high %v5600_v9, %v6806_v53  ;;  %v1451_v22 = vcombine.high %v1433_v61, %v6806_v53 }
 0x1cc   : > { %v1629_v21 = vcombine.high %v1603_v59, %v1607_v8  ;;  %v5638_v61 = vrot.slane %v2175_v60, %v4813_v39  ;;  %v1953_v4 = vcombine.low %v1942_v54, %v1946_v1  ;;  %v1783_v35 = vrot.slane %v1775_v25, %v4815_v41 }
 0x1cd   : > { %4148 = vrot.lane.b32.xlu1 %v4147_v10, %s4593_s8  ;;  %v4142_v62 = vpack.i.bf16 %v1450_v56, %v1791_v48  ;;  %v5635_v59 = vrot.slane %v1628_v50, %v4813_v39  ;;  %v4157_v0 = vpack.i.bf16 %v1451_v22, %v1792_v57  ;;  %v1954_v19 = vcombine.high %v1942_v54, %v1946_v1 }
 0x1ce   : > { %v1944_v42 = vpop.permute.xlu1 %1943  ;;  %v5626_v40 = vpop.permute.xlu0 %2056  ;;  %v5649_v7 = vrot.slane %v1629_v21, %v4813_v39  ;;  %v5653_v8 = vrot.slane %v1613_v36, %v4813_v39  ;;  %v4167_v29 = vpack.i.bf16 %v1442_v37, %v1783_v35  ;;  %v1452_v48 = vcombine.high %v1442_v37, %v6806_v53 }
 0x1cf   : > { %4143 = vrot.lane.b32.xlu0 %v4142_v62, %s4596_s6  ;;  %v1644_v10 = vcombine.low %v5646_v45, %v5635_v59  ;;  %v1961_v22 = vrot.slane %v1953_v4, %v4813_v39  ;;  %v1793_v54 = vcombine.high %v1783_v35, %v6806_v53  ;;  %v1867_v1 = vcombine.high %v5629_v33, %v5632_v3 }
 0x1d0   : > { %v2208_v49 = vcombine.high %v5638_v61, %v5641_v44  ;;  %v1660_v21 = vcombine.low %v5653_v8, %v5649_v7  ;;  %v5669_v57 = vrot.slane %v1954_v19, %v4813_v39  ;;  %v1835_v62 = vcombine.high %v5292_v11, %v5299_v12 }
 0x1d1   : > { %4158 = vrot.lane.b32.xlu1 %v4157_v0, %s4597_s12  ;;  %v1851_v37 = vcombine.high %v5306_v13, %v5313_v14  ;;  %v1435_v0 = vcombine.high %v5597_v28, %v5585_v51  ;;  %v5687_v19 = vrot.slane %v1644_v10, %v4815_v41  ;;  %v1866_v11 = vcombine.low %v5629_v33, %v5632_v3 }
 0x1d2   : > { %v1948_v60 = vpop.permute.xlu1 %1947  ;;  %v5655_v50 = vpop.permute.xlu0 %2060  ;;  %v1776_v12 = vcombine.high %v5588_v15, %v5591_v17  ;;  %v1881_v13 = vrot.slane %v1867_v1, %v4815_v41  ;;  %v2222_v14 = vrot.slane %v2208_v49, %v4815_v41  ;;  %v5702_v10 = vrot.slane %v1660_v21, %v4815_v41 }
 0x1d3   : > { %v1969_v25 = vcombine.low %v1944_v42, %v1948_v60  ;;  %v1970_v56 = vcombine.high %v1944_v42, %v1948_v60  ;;  %6816 = vst [vmem:[#allocation14_spill] sm:$0xff] %v5687_v19  ;;  %v2176_v33 = vcombine.high %v5323_v16, %v5332_v18  ;;  %v2192_v15 = vcombine.high %v5341_v34, %v5355_v26 }
 0x1d4   : > { %v2207_v17 = vcombine.low %v5638_v61, %v5641_v44  ;;  %v5714_v3 = vrot.slane %v1435_v0, %v4815_v41  ;;  %v1676_v16 = vcombine.high %v5687_v19, %v6806_v53  ;;  %v5729_v34 = vrot.slane %v1835_v62, %v4813_v39 }
 0x1d5   : > { %v1977_v36 = vrot.slane %v1969_v25, %v4813_v39  ;;  %v5673_v42 = vrot.slane %v1970_v56, %v4813_v39  ;;  %4168 = vrot.lane.b32.xlu1 %v4167_v29, %s4592_s9  ;;  %v4177_v25 = vpack.i.bf16 %v1452_v48, %v1793_v54  ;;  %v1645_v54 = vcombine.high %v5646_v45, %v5635_v59 }
 0x1d6   : > { %v5682_v4 = vpop.permute.xlu1 %2058  ;;  %v5684_v35 = vpop.permute.xlu0 %2397  ;;  %v5732_v26 = vrot.slane %v1851_v37, %v4813_v39  ;;  %v5735_v61 = vrot.slane %v1776_v12, %v4815_v41  ;;  %v4197_v44 = vpack.i.bf16 %v1881_v13, %v2222_v14  ;;  %v2068_v45 = vcombine.low %v5626_v40, %v5655_v50 }
 0x1d7   : > { %v1985_v60 = vcombine.low %v1961_v22, %v1977_v36  ;;  %v2001_v29 = vcombine.low %v5669_v57, %v5673_v42  ;;  %v1986_v51 = vcombine.high %v1961_v22, %v1977_v36  ;;  %v5744_v36 = vrot.slane %v2176_v33, %v4813_v39 }
 0x1d8   : > { %v5747_v62 = vrot.slane %v2192_v15, %v4813_v39  ;;  %v1659_v12 = vrot.slane %v1645_v54, %v4815_v41  ;;  %v1882_v33 = vcombine.low %v5729_v34, %v5732_v26  ;;  %v1899_v15 = vcombine.high %v1881_v13, %v6806_v53 }
 0x1d9   : > { %v5698_v28 = vrot.slane %v1985_v60, %v4815_v41  ;;  %4178 = vrot.lane.b32.xlu1 %v4177_v25, %s4598_s13  ;;  %v5705_v56 = vrot.slane %v2001_v29, %v4815_v41  ;;  %v2000_v21 = vrot.slane %v1986_v51, %v4815_v41  ;;  %v5752_v60 = vrot.slane %v1866_v11, %v4815_v41 }
 0x1da   : > { %v5716_v48 = vpop.permute.xlu1 %2062  ;;  %v5718_v22 = vpop.permute.xlu0 %2401  ;;  %v5755_v29 = vrot.slane %v2207_v17, %v4815_v41  ;;  %v1453_v51 = vcombine.high %v5714_v3, %v6806_v53  ;;  %v1794_v11 = vcombine.high %v5735_v61, %v6806_v53  ;;  %v2240_v17 = vcombine.high %v2222_v14, %v6806_v53 }
 0x1db   : > { %6817 = vst [vmem:[#allocation17_spill] sm:$0xff] %v5698_v28  ;;  %v4187_v1 = vpack.i.bf16 %v5705_v56, %v5702_v10  ;;  %v2017_v18 = vcombine.high %v5698_v28, %v6806_v53  ;;  %v2084_v59 = vcombine.low %v5682_v4, %v5716_v48  ;;  %6818 = vst [vmem:[#allocation18_spill] sm:$0xff] %v5752_v60 }
 0x1dc   : > { %6819 = vst [vmem:[#allocation19_spill] sm:$0xff] %v5755_v29  ;;  %v2409_v25 = vcombine.low %v5684_v35, %v5718_v22  ;;  %v4162_v54 = vpack.i.bf16 %v2000_v21, %v1659_v12  ;;  %v2002_v28 = vcombine.high %v5669_v57, %v5673_v42  ;;  %v1898_v13 = vcombine.high %v5752_v60, %v6806_v53 }
 0x1dd   : > { %4188 = vrot.lane.b32.xlu1 %v4187_v1, %s4592_s9  ;;  %v4152_v49 = vpack.i.bf16 %v2017_v18, %v1676_v16  ;;  %v2092_v1 = vrot.slane %v2084_v59, %v4813_v39  ;;  %v2076_v16 = vrot.slane %v2068_v45, %v4813_v39  ;;  %v2018_v18 = vcombine.high %v2000_v21, %v6806_v53 }
 0x1de   : > { %v2400_v37 = vpop.permute.xlu1 %2399  ;;  %v5749_v0 = vpop.permute.xlu0 %2623  ;;  %v2239_v14 = vcombine.high %v5755_v29, %v6806_v53  ;;  %v4207_v45 = vpack.i.bf16 %v1453_v51, %v1794_v11  ;;  %v1677_v21 = vcombine.high %v1659_v12, %v6806_v53  ;;  %v1661_v57 = vcombine.high %v5653_v8, %v5649_v7 }
 0x1df   : > { %4153 = vrot.lane.b32.xlu0 %v4152_v49, %s4596_s6  ;;  %v2223_v49 = vcombine.low %v5744_v36, %v5747_v62  ;;  %v2101_v42 = vcombine.high %v2076_v16, %v2092_v1  ;;  %v4217_v20 = vpack.i.bf16 %v1899_v15, %v2240_v17  ;;  %v5791_v29 = vrot.slane %v2002_v28, %v4815_v41 }
 0x1e0   : > { %v4172_v60 = vpack.i.bf16 %v2018_v18, %v1677_v21  ;;  %v5798_v51 = vrot.slane %v1882_v33, %v4815_v41  ;;  %v2410_v8 = vcombine.high %v5684_v35, %v5718_v22  ;;  %v4182_v15 = vpack.i.bf16 %v1898_v13, %v2239_v14 }
 0x1e1   : > { %4198 = vrot.lane.b32.xlu1 %v4197_v44, %s4593_s8  ;;  %v2417_v44 = vrot.slane %v2409_v25, %v4813_v39  ;;  %v5801_v12 = vrot.slane %v2223_v49, %v4815_v41  ;;  %v5807_v28 = vrot.slane %v1661_v57, %v4815_v41  ;;  %v2085_v17 = vcombine.high %v5682_v4, %v5716_v48 }
 0x1e2   : > { %v2404_v58 = vpop.permute.xlu1 %2403  ;;  %v5777_v2 = vpop.permute.xlu0 %2627  ;;  %v2069_v33 = vcombine.high %v5626_v40, %v5655_v50  ;;  %v2020_v22 = vcombine.high %v5791_v29, %v6806_v53  ;;  %v1900_v4 = vcombine.high %v5798_v51, %v6806_v53  ;;  %v2100_v50 = vcombine.low %v2076_v16, %v2092_v1 }
 0x1e3   : > { %v2425_v59 = vcombine.low %v2400_v37, %v2404_v58  ;;  %4163 = vrot.lane.b32.xlu0 %v4162_v54, %s4593_s8  ;;  %v2426_v7 = vcombine.high %v2400_v37, %v2404_v58  ;;  %v5814_v54 = vrot.slane %v2101_v42, %v4815_v41  ;;  %v2241_v40 = vcombine.high %v5801_v12, %v6806_v53 }
 0x1e4   : > { %v5834_v48 = vrot.slane %v2410_v8, %v4813_v39  ;;  %v5840_v18 = vrot.slane %v2085_v17, %v4813_v39  ;;  %v5843_v49 = vrot.slane %v2069_v33, %v4813_v39  ;;  %v4192_v1 = vpack.i.bf16 %v5714_v3, %v5735_v61 }
 0x1e5   : > { %v2433_v19 = vrot.slane %v2425_v59, %v4813_v39  ;;  %4208 = vrot.lane.b32.xlu1 %v4207_v45, %s6807_s18  ;;  %v1679_v16 = vcombine.high %v5807_v28, %v6806_v53  ;;  %v2635_v59 = vcombine.low %v5749_v0, %v5777_v2  ;;  %v1678_v3 = vcombine.high %v5702_v10, %v6806_v53 }
 0x1e6   : > { %v5793_v31 = vpop.permute.xlu1 %2625  ;;  %v5795_v25 = vpop.permute.xlu0 %2282  ;;  %v5866_v21 = vrot.slane %v2100_v50, %v4815_v41  ;;  %v2224_v10 = vcombine.high %v5744_v36, %v5747_v62  ;;  %v2116_v8 = vcombine.low %v5843_v49, %v5840_v18  ;;  %v4232_v52 = vpack.i.bf16 %v5798_v51, %v5801_v12 }
 0x1e7   : > { %v2442_v11 = vcombine.high %v2417_v44, %v2433_v19  ;;  %4173 = vrot.lane.b32.xlu0 %v4172_v60, %s4597_s12  ;;  %v2441_v58 = vcombine.low %v2417_v44, %v2433_v19  ;;  %v5831_v19 = vrot.slane %v2426_v7, %v4813_v39  ;;  %v2019_v44 = vcombine.high %v5705_v56, %v6806_v53 }
 0x1e8   : > { %6821 = vst [vmem:[#allocation21_spill] sm:$0xff] %v5866_v21  ;;  %v4237_v42 = vpack.i.bf16 %v2020_v22, %v1679_v16  ;;  %v1883_v56 = vcombine.high %v5729_v34, %v5732_v26  ;;  %v5883_v17 = vrot.slane %v2635_v59, %v4813_v39  ;;  %v2516_v34 = vcombine.low %v5346_v27, %v5358_v46 }
 0x1e9   : > { %v5817_v37 = vrot.slane %v2442_v11, %v4815_v41  ;;  %4218 = vrot.lane.b32.xlu1 %v4217_v20, %s4597_s12  ;;  %v5850_v13 = vrot.slane %v2441_v58, %v4815_v41  ;;  %v2457_v57 = vcombine.low %v5834_v48, %v5831_v19  ;;  %v4247_v11 = vpack.i.bf16 %v1900_v4, %v2241_v40 }
 0x1ea   : > { %v5820_v35 = vpop.permute.xlu1 %2629  ;;  %v5824_v60 = vpop.permute.xlu0 %2286  ;;  %v4202_v33 = vpack.i.bf16 %v2019_v44, %v1678_v3  ;;  %v2532_v26 = vcombine.low %v5367_v38, %v5376_v55  ;;  %v2132_v50 = vcombine.high %v5866_v21, %v6806_v53  ;;  %v5907_v16 = vrot.slane %v1883_v56, %v4815_v41 }
 0x1eb   : > { %4183 = vrot.lane.b32.xlu0 %v4182_v15, %s4596_s6  ;;  %v4227_v20 = vpack.i.bf16 %v5817_v37, %v5814_v54  ;;  %6820 = vst [vmem:[#allocation20_spill] sm:$0xff] %v5850_v13  ;;  %v2651_v14 = vcombine.low %v5793_v31, %v5820_v35  ;;  %v2294_v7 = vcombine.low %v5795_v25, %v5824_v60 }
 0x1ec   : > { %v2473_v58 = vcombine.high %v5850_v13, %v6806_v53  ;;  %v5895_v22 = vrot.slane %v2457_v57, %v4815_v41  ;;  %v5913_v59 = vrot.slane %v2116_v8, %v4815_v41  ;;  %v5924_v56 = vrot.slane %v2516_v34, %v4813_v39 }
 0x1ed   : > { %4228 = vrot.lane.b32.xlu1 %v4227_v20, %s4593_s8  ;;  %v5880_v15 = vrot.slane %v2651_v14, %v4813_v39  ;;  %v2302_v40 = vrot.slane %v2294_v7, %v4813_v39  ;;  %v2857_v20 = vcombine.low %v5387_v5, %v5396_v30  ;;  %v5910_v14 = vrot.slane %v2224_v10, %v4815_v41 }
 0x1ee   : > { %v5859_v45 = vpop.permute.xlu1 %2284  ;;  %v5863_v61 = vpop.permute.xlu0 %3079  ;;  %v4212_v57 = vpack.i.bf16 %v2473_v58, %v2132_v50  ;;  %v5927_v10 = vrot.slane %v2532_v26, %v4813_v39  ;;  %v1901_v58 = vcombine.high %v5907_v16, %v6806_v53  ;;  %v2533_v13 = vcombine.high %v5367_v38, %v5376_v55 }
 0x1ef   : > { %4193 = vrot.lane.b32.xlu0 %v4192_v1, %s4595_s30  ;;  %v2873_v1 = vcombine.low %v5407_v6, %v5416_v63  ;;  %v2668_v44 = vcombine.high %v5883_v17, %v5880_v15  ;;  %v2242_v34 = vcombine.high %v5910_v14, %v6806_v53  ;;  %v2636_v38 = vcombine.high %v5749_v0, %v5777_v2 }
 0x1f0   : > { %v2549_v55 = vcombine.high %v5924_v56, %v5927_v10  ;;  %v2652_v12 = vcombine.high %v5793_v31, %v5820_v35  ;;  %v2858_v2 = vcombine.high %v5387_v5, %v5396_v30  ;;  %v2874_v0 = vcombine.high %v5407_v6, %v5416_v63 }
 0x1f1   : > { %4238 = vrot.lane.b32.xlu1 %v4237_v42, %s6807_s18  ;;  %v2682_v26 = vrot.slane %v2668_v44, %v4815_v41  ;;  %v2133_v31 = vcombine.high %v5814_v54, %v6806_v53  ;;  %v2117_v6 = vcombine.high %v5843_v49, %v5840_v18  ;;  %v6005_v63 = vrot.slane %v2636_v38, %v4813_v39 }
 0x1f2   : > { %v2289_v36 = vpop.permute.xlu1 %2288  ;;  %v5892_v62 = vpop.permute.xlu0 %3083  ;;  %v6008_v54 = vrot.slane %v2549_v55, %v4815_v41 }
 0x1f3   : > { %v2310_v4 = vcombine.low %v5859_v45, %v2289_v36  ;;  %4203 = vrot.lane.b32.xlu0 %v4202_v33, %s4598_s13  ;;  %v4257_v33 = vpack.i.bf16 %v5895_v22, %v5913_v59 }
 0x1f5   : > { %v2318_v3 = vrot.slane %v2310_v4, %v4813_v39  ;;  %4248 = vrot.lane.b32.xlu1 %v4247_v11, %s4598_s13  ;;  %v5933_v4 = vrot.slane %v2857_v20, %v4813_v39  ;;  %v5936_v11 = vrot.slane %v2873_v1, %v4813_v39  ;;  %v4222_v20 = vpack.i.bf16 %v5791_v29, %v5807_v28 }
 0x1f6   : > { %v5919_v42 = vpop.permute.xlu1 %3081  ;;  %v5921_v7 = vpop.permute.xlu0 %2738  ;;  %v2517_v1 = vcombine.high %v5346_v27, %v5358_v46  ;;  %v2295_v29 = vcombine.high %v5795_v25, %v5824_v60  ;;  %v2548_v46 = vcombine.low %v5924_v56, %v5927_v10  ;;  %v4277_v28 = vpack.i.bf16 %v1901_v58, %v2242_v34 }
 0x1f7   : > { %v2327_v8 = vcombine.high %v2302_v40, %v2318_v3  ;;  %4213 = vrot.lane.b32.xlu0 %v4212_v57, %s4596_s6  ;;  %v2326_v50 = vcombine.low %v2302_v40, %v2318_v3  ;;  %v2667_v40 = vcombine.low %v5883_v17, %v5880_v15  ;;  %v2311_v3 = vcombine.high %v5859_v45, %v2289_v36 }
 0x1f8   : > { %v2890_v51 = vcombine.high %v5933_v4, %v5936_v11  ;;  %v2474_v60 = vcombine.high %v5817_v37, %v6806_v53  ;;  %v2458_v45 = vcombine.high %v5834_v48, %v5831_v19  ;;  %v5998_v5 = vrot.slane %v2295_v29, %v4813_v39 }
 0x1f9   : > { %v2341_v57 = vrot.slane %v2327_v8, %v4815_v41  ;;  %4258 = vrot.lane.b32.xlu1 %v4257_v33, %s4592_s9  ;;  %v5974_v25 = vrot.slane %v2326_v50, %v4815_v41  ;;  %v5992_v17 = vrot.slane %v2667_v40, %v4815_v41  ;;  %v5995_v37 = vrot.slane %v2311_v3, %v4813_v39 }
 0x1fa   : > { %v5951_v21 = vpop.permute.xlu1 %3085  ;;  %v5955_v44 = vpop.permute.xlu0 %2742  ;;  %v6011_v19 = vrot.slane %v2890_v51, %v4815_v41  ;;  %v6014_v48 = vrot.slane %v2652_v12, %v4813_v39  ;;  %v2700_v36 = vcombine.high %v2682_v26, %v6806_v53  ;;  %v6021_v49 = vrot.slane %v2517_v1, %v4813_v39 }
 0x1fb   : > { %4223 = vrot.lane.b32.xlu0 %v4222_v20, %s4595_s30  ;;  %v4267_v27 = vpack.i.bf16 %v2341_v57, %v2682_v26  ;;  %v2359_v30 = vcombine.high %v2341_v57, %v6806_v53  ;;  %v2358_v18 = vcombine.high %v5974_v25, %v6806_v53  ;;  %v2889_v56 = vcombine.low %v5933_v4, %v5936_v11 }
 0x1fc   : > { %v6028_v8 = vrot.slane %v2458_v45, %v4815_v41  ;;  %v2342_v33 = vcombine.low %v5998_v5, %v5995_v37  ;;  %v2699_v34 = vcombine.high %v5992_v17, %v6806_v53  ;;  %v6036_v26 = vrot.slane %v2533_v13, %v4813_v39 }
 0x1fd   : > { %4268 = vrot.lane.b32.xlu1 %v4267_v27, %s4593_s8  ;;  %v4287_v58 = vpack.i.bf16 %v2359_v30, %v2700_v36  ;;  %v6039_v50 = vrot.slane %v2858_v2, %v4813_v39  ;;  %v6042_v4 = vrot.slane %v2874_v0, %v4813_v39  ;;  %v6047_v57 = vrot.slane %v2548_v46, %v4815_v41 }
 0x1fe   : > { %v5985_v15 = vpop.permute.xlu1 %2740  ;;  %v5989_v35 = vpop.permute.xlu0 %2964  ;;  %v6050_v20 = vrot.slane %v2117_v6, %v4815_v41  ;;  %v2683_v1 = vcombine.low %v6005_v63, %v6014_v48  ;;  %v4252_v13 = vpack.i.bf16 %v2358_v18, %v2699_v34  ;;  %v4297_v40 = vpack.i.bf16 %v6011_v19, %v6008_v54 }
 0x1ff   : > { %4233 = vrot.lane.b32.xlu0 %v4232_v52, %s4592_s9  ;;  %v4242_v52 = vpack.i.bf16 %v2474_v60, %v2133_v31  ;;  %v3107_v3 = vcombine.low %v5919_v42, %v5951_v21  ;;  %v3091_v29 = vcombine.low %v5863_v61, %v5892_v62  ;;  %v4262_v46 = vpack.i.bf16 %v5907_v16, %v5910_v14 }
 0x200   : > { %v6066_v38 = vrot.slane %v2889_v56, %v4815_v41  ;;  %v6069_v55 = vrot.slane %v2342_v33, %v4815_v41  ;;  %v2750_v12 = vcombine.low %v5921_v7, %v5955_v44  ;;  %v2580_v16 = vcombine.high %v6047_v57, %v6806_v53 }
 0x201   : > { %4278 = vrot.lane.b32.xlu1 %v4277_v28, %s6807_s18  ;;  %v2476_v28 = vcombine.high %v6028_v8, %v6806_v53  ;;  %v2564_v14 = vcombine.low %v6021_v49, %v6036_v26  ;;  %v6083_v60 = vrot.slane %v2683_v1, %v4815_v41  ;;  %v2135_v2 = vcombine.high %v6050_v20, %v6806_v53 }
 0x202   : > { %v6025_v10 = vpop.permute.xlu1 %2744  ;;  %v6044_v11 = vpop.permute.xlu0 %2968  ;;  %v2475_v0 = vcombine.high %v5895_v22, %v6806_v53  ;;  %v2905_v45 = vcombine.low %v6039_v50, %v6042_v4  ;;  %v3115_v31 = vrot.slane %v3107_v3, %v4813_v39  ;;  %v3099_v30 = vrot.slane %v3091_v29, %v4813_v39 }
 0x203   : > { %4243 = vrot.lane.b32.xlu0 %v4242_v52, %s4597_s12  ;;  %v2766_v51 = vcombine.low %v5985_v15, %v6025_v10  ;;  %v2134_v52 = vcombine.high %v5913_v59, %v6806_v53  ;;  %v2921_v18 = vcombine.high %v6066_v38, %v6806_v53  ;;  %v2758_v22 = vrot.slane %v2750_v12, %v4813_v39 }
 0x204   : > { %v4307_v33 = vpack.i.bf16 %v2476_v28, %v2135_v2  ;;  %v2701_v59 = vcombine.high %v6083_v60, %v6806_v53  ;;  %v6111_v1 = vrot.slane %v2564_v14, %v4815_v41  ;;  %v3124_v3 = vcombine.high %v3099_v30, %v3115_v31 }
 0x205   : > { %4288 = vrot.lane.b32.xlu1 %v4287_v58, %s4597_s12  ;;  %v2774_v56 = vrot.slane %v2766_v51, %v4813_v39  ;;  %v2360_v58 = vcombine.high %v6069_v55, %v6806_v53  ;;  %v4272_v34 = vpack.i.bf16 %v2475_v0, %v2134_v52  ;;  %v4282_v12 = vpack.i.bf16 %v2921_v18, %v2580_v16 }
 0x206   : > { %v6061_v27 = vpop.permute.xlu1 %2966  ;;  %v6098_v36 = vpop.permute.xlu0 %3305  ;;  %v2684_v28 = vcombine.high %v6005_v63, %v6014_v48  ;;  %v2976_v0 = vcombine.low %v5989_v35, %v6044_v11 }
 0x207   : > { %4253 = vrot.lane.b32.xlu0 %v4252_v13, %s4596_s6  ;;  %v6114_v13 = vrot.slane %v2905_v45, %v4815_v41  ;;  %v4317_v51 = vpack.i.bf16 %v2360_v58, %v2701_v59  ;;  %v2581_v58 = vcombine.high %v6008_v54, %v6806_v53  ;;  %v3108_v59 = vcombine.high %v5919_v42, %v5951_v21 }
 0x208   : > { %v6145_v18 = vrot.slane %v2684_v28, %v4815_v41  ;;  %v2984_v54 = vrot.slane %v2976_v0, %v4813_v39 }
 0x209   : > { %4298 = vrot.lane.b32.xlu1 %v4297_v40, %s4593_s8  ;;  %v2343_v40 = vcombine.high %v5998_v5, %v5995_v37  ;;  %v4327_v14 = vpack.i.bf16 %v6114_v13, %v6111_v1  ;;  %v3138_v5 = vrot.slane %v3124_v3, %v4815_v41  ;;  %v3123_v3 = vcombine.low %v3099_v30, %v3115_v31 }
 0x20a   : > { %v6094_v6 = vpop.permute.xlu1 %2970  ;;  %v6123_v2 = vpop.permute.xlu0 %3309 }
 0x20b   : > { %4263 = vrot.lane.b32.xlu0 %v4262_v46, %s4595_s30  ;;  %v2783_v46 = vcombine.high %v2758_v22, %v2774_v56  ;;  %v6129_v37 = vrot.slane %v2343_v40, %v4815_v41  ;;  %v2992_v63 = vcombine.low %v6061_v27, %v6094_v6  ;;  %v3317_v52 = vcombine.low %v6098_v36, %v6123_v2 }
 0x20c   : > { %v3092_v40 = vcombine.high %v5863_v61, %v5892_v62  ;;  %v6179_v31 = vrot.slane %v3123_v3, %v4815_v41 }
 0x20d   : > { %4308 = vrot.lane.b32.xlu1 %v4307_v33, %s6807_s18  ;;  %v2797_v16 = vrot.slane %v2783_v46, %v4815_v41  ;;  %v4292_v33 = vpack.i.bf16 %v6028_v8, %v6050_v20  ;;  %v2782_v46 = vcombine.low %v2758_v22, %v2774_v56  ;;  %v2751_v8 = vcombine.high %v5921_v7, %v5955_v44 }
 0x20e   : > { %v6118_v29 = vpop.permute.xlu1 %3307  ;;  %v3000_v21 = vrot.slane %v2992_v63, %v4813_v39  ;;  %v3325_v61 = vrot.slane %v3317_v52, %v4813_v39  ;;  %v2906_v7 = vcombine.high %v6039_v50, %v6042_v4  ;;  %v2702_v44 = vcombine.high %v6145_v18, %v6806_v53 }
 0x20f   : > { %4273 = vrot.lane.b32.xlu0 %v4272_v34, %s4598_s13  ;;  %v2922_v34 = vcombine.high %v6011_v19, %v6806_v53  ;;  %v2361_v19 = vcombine.high %v6129_v37, %v6806_v53  ;;  %v4337_v62 = vpack.i.bf16 %v2797_v16, %v3138_v5  ;;  %v6176_v20 = vrot.slane %v3092_v40, %v4813_v39 }
 0x210   : > { %v6182_v30 = vrot.slane %v2782_v46, %v4815_v41  ;;  %v2765_v50 = vrot.slane %v2751_v8, %v4813_v39  ;;  %v3156_v56 = vcombine.high %v3138_v5, %v6806_v53  ;;  %v3155_v5 = vcombine.high %v6179_v31, %v6806_v53 }
 0x211   : > { %4318 = vrot.lane.b32.xlu1 %v4317_v51, %s4598_s13  ;;  %v2767_v51 = vcombine.high %v5985_v15, %v6025_v10  ;;  %v2565_v15 = vcombine.high %v6021_v49, %v6036_v26  ;;  %v4312_v10 = vpack.i.bf16 %v2922_v34, %v2581_v58  ;;  %v4302_v49 = vpack.i.bf16 %v6069_v55, %v6083_v60 }
 0x212   : > { %v6134_v45 = vpop.permute.xlu1 %3311  ;;  %v3122_v26 = vrot.slane %v3108_v59, %v4813_v39  ;;  %v4347_v4 = vpack.i.bf16 %v2361_v19, %v2702_v44  ;;  %v6197_v55 = vrot.slane %v2906_v7, %v4815_v41  ;;  %v2814_v60 = vcombine.high %v6182_v30, %v6806_v53 }
 0x213   : > { %4283 = vrot.lane.b32.xlu0 %v4282_v12, %s4596_s6  ;;  %v3333_v48 = vcombine.low %v6118_v29, %v6134_v45  ;;  %v2781_v22 = vrot.slane %v2767_v51, %v4813_v39  ;;  %v3009_v12 = vcombine.high %v2984_v54, %v3000_v21  ;;  %v6194_v0 = vrot.slane %v2565_v15, %v4815_v41 }
 0x214   : > { %v3139_v63 = vcombine.low %v6176_v20, %v3122_v26  ;;  %v2924_v34 = vcombine.high %v6197_v55, %v6806_v53  ;;  %v2582_v59 = vcombine.high %v6111_v1, %v6806_v53  ;;  %v3008_v40 = vcombine.low %v2984_v54, %v3000_v21  ;;  %v6232_v21 = vpop.permute.xlu0 %3420 }
 0x215   : > { %4328 = vrot.lane.b32.xlu1 %v4327_v14, %s4592_s9  ;;  %v3341_v42 = vrot.slane %v3333_v48, %v4813_v39  ;;  %v2815_v14 = vcombine.high %v2797_v16, %v6806_v53  ;;  %v2798_v48 = vcombine.low %v2765_v50, %v2781_v22  ;;  %v6206_v52 = vrot.slane %v3009_v12, %v4815_v41 }
 0x216   : > { %v2583_v58 = vcombine.high %v6194_v0, %v6806_v53  ;;  %v4322_v46 = vpack.i.bf16 %v2814_v60, %v3155_v5  ;;  %v2923_v51 = vcombine.high %v6114_v13, %v6806_v53  ;;  %v6222_v8 = vrot.slane %v3139_v63, %v4815_v41  ;;  %v6230_v54 = vpop.permute.xlu1 %3422 }
 0x217   : > { %4293 = vrot.lane.b32.xlu0 %v4292_v33, %s4595_s30  ;;  %v3350_v28 = vcombine.high %v3325_v61, %v3341_v42  ;;  %v4357_v33 = vpack.i.bf16 %v2815_v14, %v3156_v56  ;;  %v3349_v3 = vcombine.low %v3325_v61, %v3341_v42  ;;  %v6225_v19 = vrot.slane %v2798_v48, %v4815_v41 }
 0x218   : > { %v4377_v1 = vpack.i.bf16 %v2924_v34, %v2583_v58  ;;  %v6235_v13 = vrot.slane %v3008_v40, %v4815_v41  ;;  %v4332_v61 = vpack.i.bf16 %v6129_v37, %v6145_v18  ;;  %v4342_v15 = vpack.i.bf16 %v2923_v51, %v2582_v59  ;;  %v3425_v12 = vpop.permute.xlu0 %3424 }
 0x219   : > { %4338 = vrot.lane.b32.xlu1 %v4337_v62, %s4593_s8  ;;  %v6209_v16 = vrot.slane %v3350_v28, %v4815_v41  ;;  %v6238_v42 = vrot.slane %v3349_v3, %v4815_v41  ;;  %v3140_v7 = vcombine.high %v6176_v20, %v3122_v26  ;;  %v2799_v44 = vcombine.high %v2765_v50, %v2781_v22  ;;  %v4457_v20 = vld [vmem:[%s5343_s16 + $0x2] sm:$0xff] }
 0x21a   : > { %v3334_v56 = vcombine.high %v6118_v29, %v6134_v45  ;;  %v3318_v37 = vcombine.high %v6098_v36, %v6123_v2  ;;  %v2816_v18 = vcombine.high %v6225_v19, %v6806_v53  ;;  %v4458_v26 = vld [vmem:[%s5343_s16 + $0x22] sm:$0xff]  ;;  %v4460_v29 = vld [vmem:[%s5343_s16 + $0x32] sm:$0xff]  ;;  %v3427_v22 = vpop.permute.xlu1 %3426  ;;  %v3433_v34 = vcombine.high %v6232_v21, %v3425_v12 }
 0x21b   : > { %4303 = vrot.lane.b32.xlu0 %v4302_v49, %s4592_s9  ;;  %v4367_v62 = vpack.i.bf16 %v6209_v16, %v6206_v52  ;;  %v3157_v49 = vcombine.high %v6222_v8, %v6806_v53  ;;  %v3154_v36 = vrot.slane %v3140_v7, %v4815_v41  ;;  %v2813_v2 = vrot.slane %v2799_v44, %v4815_v41 }
 0x21c   : > { %v3348_v14 = vrot.slane %v3334_v56, %v4813_v39  ;;  %v3332_v60 = vrot.slane %v3318_v37, %v4813_v39  ;;  %v3198_v63 = vcombine.low %v4457_v20, %v4458_v26  ;;  %v3449_v58 = vcombine.high %v6230_v54, %v3427_v22 }
 0x21d   : > { %4348 = vrot.lane.b32.xlu1 %v4347_v4, %s6807_s18  ;;  %v2993_v4 = vcombine.high %v6061_v27, %v6094_v6  ;;  %v3381_v27 = vcombine.high %v6238_v42, %v6806_v53  ;;  %v4459_v6 = vld [vmem:[%s5343_s16 + $0x12] sm:$0xff]  ;;  %v4387_v5 = vpack.i.bf16 %v2816_v18, %v3157_v49  ;;  %v4362_v3 = vpack.i.bf16 %v6197_v55, %v6194_v0  ;;  %s3669_s16 = scalar_lea.sflag [#allocation6], %s4791_s28 }
 0x21e   : > { %v3215_v45 = vcombine.high %v4459_v6, %v4460_v29  ;;  %v3214_v48 = vcombine.low %v4459_v6, %v4460_v29  ;;  %v3448_v7 = vcombine.low %v6230_v54, %v3427_v22  ;;  %v3463_v44 = vrot.slane %v3449_v58, %v4813_v39 }
 0x21f   : > { %4313 = vrot.lane.b32.xlu0 %v4312_v10, %s4597_s12  ;;  %v2977_v10 = vcombine.high %v5989_v35, %v6044_v11  ;;  %v3199_v35 = vcombine.high %v4457_v20, %v4458_v26  ;;  %v3040_v11 = vcombine.high %v6235_v13, %v6806_v53  ;;  %v3007_v28 = vrot.slane %v2993_v4, %v4813_v39 }
 0x220   : > { %v3229_v40 = vrot.slane %v3215_v45, %v4813_v39  ;;  %v3206_v0 = vrot.slane %v3198_v63, %v4813_v39  ;;  %v3222_v55 = vrot.slane %v3214_v48, %v4813_v39  ;;  %v4372_v54 = vpack.i.bf16 %v6225_v19, %v6222_v8 }
 0x221   : > { %4358 = vrot.lane.b32.xlu1 %v4357_v33, %s4597_s12  ;;  %v2991_v50 = vrot.slane %v2977_v10, %v4813_v39  ;;  %v4352_v33 = vpack.i.bf16 %v3381_v27, %v3040_v11  ;;  %v3213_v59 = vrot.slane %v3199_v35, %v4813_v39  ;;  %v3447_v10 = vrot.slane %v3433_v34, %v4813_v39 }
 0x222   : > { %v3041_v20 = vcombine.high %v6206_v52, %v6806_v53  ;;  %v3365_v26 = vcombine.low %v3332_v60, %v3348_v14  ;;  %v3456_v35 = vrot.slane %v3448_v7, %v4813_v39  ;;  %v3382_v27 = vcombine.high %v6209_v16, %v6806_v53 }
 0x223   : > { %4323 = vrot.lane.b32.xlu0 %v4322_v46, %s4596_s6  ;;  %v3158_v46 = vcombine.high %v3154_v36, %v6806_v53  ;;  %v3025_v51 = vcombine.high %v2991_v50, %v3007_v28  ;;  %v3024_v37 = vcombine.low %v2991_v50, %v3007_v28  ;;  %v3480_v11 = vcombine.low %v3447_v10, %v3463_v44 }
 0x224   : > { %v3230_v8 = vcombine.low %v3206_v0, %v3222_v55  ;;  %v4382_v16 = vpack.i.bf16 %v3382_v27, %v3041_v20  ;;  %v3481_v50 = vcombine.high %v3447_v10, %v3463_v44 }
 0x225   : > { %4368 = vrot.lane.b32.xlu1 %v4367_v62, %s4593_s8  ;;  %v3366_v62 = vcombine.high %v3332_v60, %v3348_v14  ;;  %v3039_v49 = vrot.slane %v3025_v51, %v4815_v41  ;;  %v3032_v19 = vrot.slane %v3024_v37, %v4815_v41 }
 0x226   : > { %v6313_v14 = vrot.slane %v3230_v8, %v4815_v41 }
 0x227   : > { %4333 = vrot.lane.b32.xlu0 %v4332_v61, %s4595_s30  ;;  %v2817_v61 = vcombine.high %v2813_v2, %v6806_v53  ;;  %v3380_v4 = vrot.slane %v3366_v62, %v4815_v41  ;;  %v3043_v29 = vcombine.high %v3039_v49, %v6806_v53  ;;  %v3042_v28 = vcombine.high %v3032_v19, %v6806_v53 }
 0x229   : > { %4378 = vrot.lane.b32.xlu1 %v4377_v1, %s6807_s18  ;;  %v4397_v1 = vpack.i.bf16 %v2813_v2, %v3154_v36  ;;  %v4407_v56 = vpack.i.bf16 %v2817_v61, %v3158_v46  ;;  %v4417_v6 = vpack.i.bf16 %v3380_v4, %v3039_v49  ;;  %v3384_v45 = vcombine.high %v3380_v4, %v6806_v53 }
 0x22a   : > { %v3373_v36 = vrot.slane %v3365_v26, %v4815_v41  ;;  %v3262_v46 = vcombine.high %v6313_v14, %v6806_v53 }
 0x22b   : > { %4343 = vrot.lane.b32.xlu0 %v4342_v15, %s4598_s13  ;;  %v3432_v15 = vcombine.low %v6232_v21, %v3425_v12  ;;  %v3246_v21 = vcombine.low %v3213_v59, %v3229_v40  ;;  %v4427_v22 = vpack.i.bf16 %v3384_v45, %v3043_v29  ;;  %v3247_v12 = vcombine.high %v3213_v59, %v3229_v40 }
 0x22c   : > { %v3383_v48 = vcombine.high %v3373_v36, %v6806_v53  ;;  %v3231_v59 = vcombine.high %v3206_v0, %v3222_v55  ;;  %v4126_v45 = vunpack.i.h.bf16 %v5513_v24 }
 0x22d   : > { %4388 = vrot.lane.b32.xlu1 %v4387_v5, %s4598_s13  ;;  %v3440_v18 = vrot.slane %v3432_v15, %v4813_v39  ;;  %v3254_v52 = vrot.slane %v3246_v21, %v4815_v41  ;;  %v3488_v39 = vrot.slane %v3480_v11, %v4815_v41  ;;  %v4392_v5 = vpack.i.bf16 %v3373_v36, %v3032_v19 }
 0x22e   : > { %v3261_v34 = vrot.slane %v3247_v12, %v4815_v41  ;;  %v3245_v7 = vrot.slane %v3231_v59, %v4815_v41  ;;  %v4131_v36 = vunpack.i.h.bf16 %v5522_v23 }
 0x22f   : > { %4353 = vrot.lane.b32.xlu0 %v4352_v33, %s4596_s6  ;;  %v3464_v2 = vcombine.low %v3440_v18, %v3456_v35  ;;  %v4437_v63 = vpack.i.bf16 %v3488_v39, %v3254_v52  ;;  %v3495_v33 = vrot.slane %v3481_v50, %v4815_v41  ;;  %v3465_v40 = vcombine.high %v3440_v18, %v3456_v35 }
 0x230   : > { %v3263_v0 = vcombine.high %v3245_v7, %v6806_v53  ;;  %v3264_v21 = vcombine.high %v3254_v52, %v6806_v53  ;;  %v3498_v37 = vcombine.high %v3488_v39, %v6806_v53  ;;  %v3265_v20 = vcombine.high %v3261_v34, %v6806_v53 }
 0x231   : > { %4398 = vrot.lane.b32.xlu1 %v4397_v1, %s4595_s30  ;;  %v6316_v60 = vrot.slane %v3464_v2, %v4815_v41  ;;  %v4447_v1 = vpack.i.bf16 %v3495_v33, %v3261_v34  ;;  %v3479_v61 = vrot.slane %v3465_v40, %v4815_v41  ;;  %v3499_v26 = vcombine.high %v3495_v33, %v6806_v53  ;;  %v6823_v34 = vld [vmem:[#allocation15_spill] sm:$0xff] }
 0x232   : > { %v4076_v59 = vunpack.i.h.bf16 %v6823_v34 }
 0x233   : > { %4363 = vrot.lane.b32.xlu0 %v4362_v3, %s4595_s30  ;;  %v4402_v3 = vpack.i.bf16 %v3383_v48, %v3042_v28  ;;  %v3496_v51 = vcombine.high %v6316_v60, %v6806_v53  ;;  %v4422_v10 = vpack.i.bf16 %v3479_v61, %v3245_v7  ;;  %v3497_v55 = vcombine.high %v3479_v61, %v6806_v53 }
 0x234   : > { %v4452_v27 = vpack.i.bf16 %v3499_v26, %v3265_v20  ;;  %v1589_v53 = vsel %vm559_vm0, %v5234_v43, %v4126_v45  ;;  %v6825_v20 = vld [vmem:[#allocation14_spill] sm:$0xff] }
 0x235   : > { %4408 = vrot.lane.b32.xlu1 %v4407_v56, %s6807_s18  ;;  %v4412_v15 = vpack.i.bf16 %v3496_v51, %v3262_v46  ;;  %v4432_v56 = vpack.i.bf16 %v3497_v55, %v3263_v0 }
 0x237   : > { %4373 = vrot.lane.b32.xlu0 %v4372_v54, %s4592_s9  ;;  %v4442_v54 = vpack.i.bf16 %v3498_v37, %v3264_v21  ;;  %v6824_v21 = vld [vmem:[#allocation12_spill] sm:$0xff] }
 0x239   : > { %4418 = vrot.lane.b32.xlu1 %v4417_v6, %s4595_s30 }
 0x23b   : > { %4383 = vrot.lane.b32.xlu0 %v4382_v16, %s4597_s12  ;;  %v4071_v16 = vunpack.i.h.bf16 %v5428_v47 }
 0x23d   : > { %4428 = vrot.lane.b32.xlu1 %v4427_v22, %s6807_s18  ;;  %v1590_v24 = vsel %vm561_vm1, %v1589_v53, %v4071_v16 }
 0x23e   : > { %v1591_v28 = vsel %vm563_vm2, %v1590_v24, %v4131_v36 }
 0x23f   : > { %v6321_v58 = vpop.permute.xlu1 %4148  ;;  %4393 = vrot.lane.b32.xlu0 %v4392_v5, %s4592_s9 }
 0x240   : > { %v4150_v12 = vunpack.i.l.bf16 %v6321_v58  ;;  %v4151_v47 = vunpack.i.h.bf16 %v6321_v58 }
 0x241   : > { %4438 = vrot.lane.b32.xlu1 %v4437_v63, %s4592_s9  ;;  %v4144_v4 = vpop.permute.xlu0 %4143  ;;  %v6822_v63 = vld [vmem:[#allocation13_spill] sm:$0xff] }
 0x242   : > { %v4145_v19 = vunpack.i.l.bf16 %v4144_v4  ;;  %v4146_v2 = vunpack.i.h.bf16 %v4144_v4  ;;  %v4136_v48 = vunpack.i.h.bf16 %v6822_v63 }
 0x243   : > { %v6330_v62 = vpop.permute.xlu1 %4158  ;;  %4403 = vrot.lane.b32.xlu0 %v4402_v3, %s4598_s13 }
 0x244   : > { %v1823_v50 = vsel %vm559_vm0, %v5594_v32, %v4145_v19  ;;  %v1482_v43 = vsel %vm559_vm0, %v5600_v9, %v4146_v2  ;;  %v4160_v23 = vunpack.i.l.bf16 %v6330_v62  ;;  %v4161_v40 = vunpack.i.h.bf16 %v6330_v62 }
 0x245   : > { %4448 = vrot.lane.b32.xlu1 %v4447_v1, %s4595_s30  ;;  %v1824_v32 = vsel %vm561_vm1, %v1823_v50, %v4150_v12  ;;  %v1483_v51 = vsel %vm561_vm1, %v1482_v43, %v4151_v47  ;;  %s3842_s30 = sshll.u32 %s4791_s28, 3 }
 0x246   : > { %v1825_v7 = vsel %vm563_vm2, %v1824_v32, %v4160_v23  ;;  %v1484_v37 = vsel %vm563_vm2, %v1483_v51, %v4161_v40  ;;  %s456_s14 = scalar_lea.vmem [#allocation5], %s3842_s30 }
 0x247   : > { %v6336_v44 = vpop.permute.xlu1 %4168  ;;  %4413 = vrot.lane.b32.xlu0 %v4412_v15, %s4596_s6  ;;  %v1592_v15 = vsel %vm565_vm3, %v1591_v28, %v4076_v59  ;;  %s3846_s6 = sshll.u32 %s4575_s23, 2  ;;  %s3684_s29 = sshll.u32 %s456_s14, 4  ;;  %s6700_s29 = int_to_ptr.vmem [resolvable:$true] %s3684_s29 }
 0x248   : > { %v4170_v33 = vunpack.i.l.bf16 %v6336_v44  ;;  %v4171_v1 = vunpack.i.h.bf16 %v6336_v44  ;;  %v1593_v55 = vsel %vm567_vm4, %v1592_v15, %v4136_v48  ;;  %v4141_v44 = vunpack.i.h.bf16 %v6824_v21  ;;  %s4461_s23 = scalar_lea.vmem %s6700_s29, 128 }
 0x249   : > { %p4462_p7 = scmp.ne.s32.totalorder %s6700_s29, %s4461_s23 }
 0x24a   : > { %v1826_v4 = vsel %vm565_vm3, %v1825_v7, %v4170_v33  ;;  %v1485_v19 = vsel %vm565_vm3, %v1484_v37, %v4171_v1 }
 0x24b   : > { %v6341_v49 = vpop.permute.xlu1 %4178  ;;  %4423 = vrot.lane.b32.xlu0 %v4422_v10, %s4593_s8  ;;  %s6833_s8 = sld [smem:[#allocation22_spill]]  ;;  %p4463_p8 = pnand %p4462_p7, %p4753_p0 }
 0x24c   : > { %v4180_v3 = vunpack.i.l.bf16 %v6341_v49  ;;  %v4181_v10 = vunpack.i.h.bf16 %v6341_v49  ;;  %v6826_v49 = vld [vmem:[#allocation16_spill] sm:$0xff] }
 0x24d   : > { %v4081_v45 = vunpack.i.h.bf16 %v6826_v49  ;;  %p4464_p9 = pneg %p4463_p8 }
 0x24e   : > { %v1486_v2 = vsel %vm567_vm4, %v1485_v19, %v4181_v10 }
 0x24f   : > { %v6346_v41 = vpop.permute.xlu1 %4188  ;;  %4433 = vrot.lane.b32.xlu0 %v4432_v56, %s4597_s12  ;;  %v1594_v12 = vsel %vm569_vm5, %v1593_v55, %v4081_v45  ;;  %v6827_v55 = vmov 0.0|0.0   ;;  %s3680_s12 = sadd.s32 %s4571_s22, %s3846_s6  ;;  %s4604_s22 = smov [#allocation5]  }
 0x250   : > { %v4190_v28 = vunpack.i.l.bf16 %v6346_v41  ;;  %v1595_v23 = vsel %vm571_vm6, %v1594_v12, %v4141_v44  ;;  %s4465_s4 = sshll.u32 %s4604_s22, 4  ;;  %s4466_s4 = int_to_ptr.vmem [resolvable:$false] %s4465_s4 }
 0x251   : > { %v6349_v18 = vpop.permute.xlu0 %4153  ;;  %s4467_s9 = scalar_lea.vmem %s4466_s4, 256  ;;  %p4468_p10 = scmp.lt.s32.totalorder %s6700_s29, %s4466_s4 }
 0x252   : > { %v4155_v9 = vunpack.i.l.bf16 %v6349_v18  ;;  %p4469_p11 = scmp.lt.s32.totalorder %s4467_s9, %s4461_s23 }
 0x253   : > { %v6354_v35 = vpop.permute.xlu1 %4198  ;;  %4443 = vrot.lane.b32.xlu0 %v4442_v54, %s4598_s13  ;;  %v1827_v54 = vsel %vm567_vm4, %v1826_v4, %v4180_v3  ;;  %s3847_s13 = sshll.u32 %s3680_s12, 7 }
 0x254   : > { %v1708_v26 = vsel %vm559_vm0, %v6825_v20, %v4155_v9  ;;  %v3548_v9 = vrot.slane %v1595_v23, 4  ;;  %v4200_v37 = vunpack.i.l.bf16 %v6354_v35  ;;  %v6828_v20 = vld [vmem:[#allocation19_spill] sm:$0xff]  ;;  %v4201_v45 = vunpack.i.h.bf16 %v6354_v35  ;;  %s6698_s7 = scalar_lea.hbm %s6834_s0, %s3847_s13  ;;  %p4470_p12 = por %p4469_p11, %p4468_p10 }
 0x255   : > { %v6357_v11 = vpop.permute.xlu0 %4163 }
 0x256   : > { %v4165_v58 = vunpack.i.l.bf16 %v6357_v11  ;;  %v4166_v19 = vunpack.i.h.bf16 %v6357_v11  ;;  %p4471_p13 = pnand %p4470_p12, %p4464_p9 }
 0x257   : > { %v6359_v6 = vpop.permute.xlu1 %4208  ;;  %4453 = vrot.lane.b32.xlu0 %v4452_v27, %s6807_s18 }
 0x258   : > { %v1709_v53 = vsel %vm561_vm1, %v1708_v26, %v4165_v58  ;;  %v4210_v16 = vunpack.i.l.bf16 %v6359_v6  ;;  %v4211_v63 = vunpack.i.h.bf16 %v6359_v6 }
 0x259   : > { %v6362_v29 = vpop.permute.xlu0 %4173 }
 0x25a   : > { %v4175_v62 = vunpack.i.l.bf16 %v6362_v29 }
 0x25b   : > { %v6365_v8 = vpop.permute.xlu1 %4218 }
 0x25c   : > { %v1710_v50 = vsel %vm563_vm2, %v1709_v53, %v4175_v62  ;;  %v4176_v53 = vunpack.i.h.bf16 %v6362_v29 }
 0x25d   : > { %v6367_v52 = vpop.permute.xlu0 %4183  ;;  %v1711_v32 = vsel %vm565_vm3, %v1710_v50, %v4190_v28  ;;  %v4221_v28 = vunpack.i.h.bf16 %v6365_v8 }
 0x25e   : > { %v4185_v4 = vunpack.i.l.bf16 %v6367_v52  ;;  %v4186_v21 = vunpack.i.h.bf16 %v6367_v52  ;;  %v6829_v52 = vld [vmem:[#allocation18_spill] sm:$0xff] }
 0x25f   : > { %v6372_v39 = vpop.permute.xlu1 %4228 }
 0x260   : > { %v2271_v26 = vsel %vm559_vm0, %v6828_v20, %v4185_v4 }
 0x261   : > { %v4194_v22 = vpop.permute.xlu0 %4193  ;;  %v2272_v50 = vsel %vm561_vm1, %v2271_v26, %v4200_v37 }
 0x262   : > { %v4195_v61 = vunpack.i.l.bf16 %v4194_v22  ;;  %v4196_v56 = vunpack.i.h.bf16 %v4194_v22 }
 0x263   : > { %v6383_v5 = vpop.permute.xlu1 %4238 }
 0x264   : > { %v1828_v36 = vsel %vm569_vm5, %v1827_v54, %v4195_v61  ;;  %v1487_v43 = vsel %vm569_vm5, %v1486_v2, %v4196_v56  ;;  %v4240_v34 = vunpack.i.l.bf16 %v6383_v5  ;;  %v4156_v54 = vunpack.i.h.bf16 %v6349_v18 }
 0x265   : > { %v6393_v46 = vpop.permute.xlu0 %4203  ;;  %v1829_v48 = vsel %vm571_vm6, %v1828_v36, %v4210_v16  ;;  %v1488_v3 = vsel %vm571_vm6, %v1487_v43, %v4211_v63  ;;  %v4220_v36 = vunpack.i.l.bf16 %v6365_v8  ;;  %v1930_v2 = vsel %vm559_vm0, %v6829_v52, %v4186_v21 }
 0x266   : > { %v4205_v22 = vunpack.i.l.bf16 %v6393_v46  ;;  %v3551_v51 = vrot.slane %v1829_v48, 4  ;;  %v3564_v61 = vsel %vm3559_vm7, %v1488_v3, %v3548_v9  ;;  %v1931_v29 = vsel %vm561_vm1, %v1930_v2, %v4201_v45 }
 0x267   : > { %v6402_v0 = vpop.permute.xlu1 %4248  ;;  %v4206_v48 = vunpack.i.h.bf16 %v6393_v46  ;;  %v4191_v8 = vunpack.i.h.bf16 %v6346_v41  ;;  %v1932_v46 = vsel %vm563_vm2, %v1931_v29, %v4221_v28 }
 0x268   : > { %v1712_v59 = vsel %vm567_vm4, %v1711_v32, %v4205_v22  ;;  %v6830_v22 = vld [vmem:[#allocation17_spill] sm:$0xff]  ;;  %v4250_v32 = vunpack.i.l.bf16 %v6402_v0 }
 0x269   : > { %v6411_v27 = vpop.permute.xlu0 %4213  ;;  %v2049_v12 = vsel %vm559_vm0, %v6830_v22, %v4156_v54  ;;  %v4241_v54 = vunpack.i.h.bf16 %v6383_v5 }
 0x26a   : > { %v4215_v35 = vunpack.i.l.bf16 %v6411_v27  ;;  %v2050_v11 = vsel %vm561_vm1, %v2049_v12, %v4166_v19 }
 0x26b   : > { %v6421_v24 = vpop.permute.xlu1 %4258  ;;  %v2051_v63 = vsel %vm563_vm2, %v2050_v11, %v4176_v53 }
 0x26c   : > { %v2052_v41 = vsel %vm565_vm3, %v2051_v63, %v4191_v8 }
 0x26d   : > { %v6429_v47 = vpop.permute.xlu0 %4223  ;;  %v2053_v4 = vsel %vm567_vm4, %v2052_v41, %v4206_v48  ;;  %v6832_v41 = vld [vmem:[#allocation20_spill] sm:$0xff] }
 0x26e   : > { %v4225_v33 = vunpack.i.l.bf16 %v6429_v47 }
 0x26f   : > { %v6435_v40 = vpop.permute.xlu1 %4268 }
 0x270   : > { %v1713_v6 = vsel %vm569_vm5, %v1712_v59, %v4225_v33  ;;  %v2273_v33 = vsel %vm563_vm2, %v2272_v50, %v4220_v36  ;;  %v4226_v59 = vunpack.i.h.bf16 %v6429_v47 }
 0x271   : > { %v4234_v1 = vpop.permute.xlu0 %4233  ;;  %v1714_v58 = vsel %vm571_vm6, %v1713_v6, %v4240_v34  ;;  %v6831_v6 = vld [vmem:[#allocation21_spill] sm:$0xff] }
 0x272   : > { %v3565_v15 = vsel %vm3559_vm7, %v1714_v58, %v3551_v51  ;;  %v4235_v18 = vunpack.i.l.bf16 %v4234_v1  ;;  %v4236_v23 = vunpack.i.h.bf16 %v4234_v1  ;;  %v4251_v51 = vunpack.i.h.bf16 %v6402_v0 }
 0x273   : > { %v6442_v7 = vpop.permute.xlu1 %4278  ;;  %v3903_v10 = vpack.c.bf16 %v3565_v15, %v3564_v61  ;;  %v2164_v1 = vsel %vm559_vm0, %v6831_v6, %v4215_v35  ;;  %v4230_v15 = vunpack.i.l.bf16 %v6372_v39  ;;  %v2054_v20 = vsel %vm569_vm5, %v2053_v4, %v4226_v59 }
 0x274   : > { %v2274_v3 = vsel %vm565_vm3, %v2273_v33, %v4235_v18  ;;  %v1933_v47 = vsel %vm565_vm3, %v1932_v46, %v4236_v23  ;;  %v4280_v0 = vunpack.i.l.bf16 %v6442_v7  ;;  %v4281_v19 = vunpack.i.h.bf16 %v6442_v7 }
 0x275   : > { %v6444_v62 = vpop.permute.xlu0 %4243  ;;  %3904 = vmatpush3.bf16.msra.mxu0 %v3903_v10  ;;  %v2275_v21 = vsel %vm567_vm4, %v2274_v3, %v4250_v32  ;;  %v2165_v26 = vsel %vm561_vm1, %v2164_v1, %v4230_v15  ;;  %v1934_v36 = vsel %vm567_vm4, %v1933_v47, %v4251_v51  ;;  %v2055_v50 = vsel %vm571_vm6, %v2054_v20, %v4241_v54 }
 0x276   : > { %3905 = vmatprep.subr.bf16.mxu0 %v6827_v55  ;;  %v4245_v58 = vunpack.i.l.bf16 %v6444_v62  ;;  %v3554_v23 = vrot.slane %v2055_v50, 4  ;;  %v4216_v6 = vunpack.i.h.bf16 %v6411_v27  ;;  %v4231_v4 = vunpack.i.h.bf16 %v6372_v39 }
 0x277   : > { %v6448_v56 = vpop.permute.xlu1 %4288 }
 0x278   : > { %v2166_v53 = vsel %vm563_vm2, %v2165_v26, %v4245_v58  ;;  %v2505_v47 = vsel %vm559_vm0, %v6832_v41, %v4216_v6  ;;  %v4271_v26 = vunpack.i.h.bf16 %v6435_v40 }
 0x279   : > { %v6451_v44 = vpop.permute.xlu0 %4253  ;;  %v2506_v54 = vsel %vm561_vm1, %v2505_v47, %v4231_v4 }
 0x27a   : > { %v4255_v1 = vunpack.i.l.bf16 %v6451_v44  ;;  %v4256_v58 = vunpack.i.h.bf16 %v6451_v44 }
 0x27b   : > { %v6457_v49 = vpop.permute.xlu1 %4298 }
 0x27c   : > { %v2731_v27 = vsel %vm559_vm0, %v5992_v17, %v4255_v1  ;;  %v2390_v44 = vsel %vm559_vm0, %v5974_v25, %v4256_v58  ;;  %v4290_v17 = vunpack.i.l.bf16 %v6448_v56 }
 0x27d   : > { %v4264_v16 = vpop.permute.xlu0 %4263 }
 0x27e   : > { %v4265_v9 = vunpack.i.l.bf16 %v4264_v16  ;;  %v4266_v10 = vunpack.i.h.bf16 %v4264_v16  ;;  %v4260_v16 = vunpack.i.l.bf16 %v6421_v24 }
 0x27f   : > { %v6470_v43 = vpop.permute.xlu1 %4308 }
 0x280   : > { %v2276_v45 = vsel %vm569_vm5, %v2275_v21, %v4265_v9  ;;  %v1935_v5 = vsel %vm569_vm5, %v1934_v36, %v4266_v10  ;;  %v2167_v7 = vsel %vm565_vm3, %v2166_v53, %v4260_v16  ;;  %v4310_v28 = vunpack.i.l.bf16 %v6470_v43 }
 0x281   : > { %v6478_v34 = vpop.permute.xlu0 %4273  ;;  %v2277_v18 = vsel %vm571_vm6, %v2276_v45, %v4280_v0  ;;  %v1936_v29 = vsel %vm571_vm6, %v1935_v5, %v4281_v19  ;;  %v4246_v10 = vunpack.i.h.bf16 %v6444_v62  ;;  %v4270_v21 = vunpack.i.l.bf16 %v6435_v40 }
 0x282   : > { %v4275_v52 = vunpack.i.l.bf16 %v6478_v34  ;;  %v3557_v63 = vrot.slane %v2277_v18, 4  ;;  %v3566_v8 = vsel %vm3559_vm7, %v1936_v29, %v3554_v23  ;;  %v4261_v19 = vunpack.i.h.bf16 %v6421_v24 }
 0x283   : > { %v6488_v61 = vpop.permute.xlu1 %4318  ;;  %v2507_v45 = vsel %vm563_vm2, %v2506_v54, %v4246_v10  ;;  %v2732_v62 = vsel %vm561_vm1, %v2731_v27, %v4270_v21  ;;  %v4276_v25 = vunpack.i.h.bf16 %v6478_v34  ;;  %v4291_v40 = vunpack.i.h.bf16 %v6448_v56 }
 0x284   : > { %v2168_v35 = vsel %vm567_vm4, %v2167_v7, %v4275_v52  ;;  %v2391_v52 = vsel %vm561_vm1, %v2390_v44, %v4271_v26  ;;  %v2508_v5 = vsel %vm565_vm3, %v2507_v45, %v4261_v19  ;;  %v2733_v50 = vsel %vm563_vm2, %v2732_v62, %v4290_v17 }
 0x285   : > { %v6496_v37 = vpop.permute.xlu0 %4283  ;;  %v4300_v24 = vunpack.i.l.bf16 %v6457_v49  ;;  %v2392_v56 = vsel %vm563_vm2, %v2391_v52, %v4291_v40  ;;  %v4301_v45 = vunpack.i.h.bf16 %v6457_v49 }
 0x286   : > { %v4285_v53 = vunpack.i.l.bf16 %v6496_v37 }
 0x287   : > { %v6506_v2 = vpop.permute.xlu1 %4328 }
 0x288   : > { %v2612_v34 = vsel %vm559_vm0, %v6047_v57, %v4285_v53 }
 0x289   : > { %v6512_v22 = vpop.permute.xlu0 %4293  ;;  %v2613_v1 = vsel %vm561_vm1, %v2612_v34, %v4300_v24 }
 0x28a   : > { %v4295_v12 = vunpack.i.l.bf16 %v6512_v22  ;;  %v4296_v7 = vunpack.i.h.bf16 %v6512_v22 }
 0x28b   : > { %v6518_v11 = vpop.permute.xlu1 %4338 }
 0x28c   : > { %v2169_v48 = vsel %vm569_vm5, %v2168_v35, %v4295_v12  ;;  %v4320_v35 = vunpack.i.l.bf16 %v6488_v61  ;;  %v4340_v17 = vunpack.i.l.bf16 %v6518_v11 }
 0x28d   : > { %v4304_v32 = vpop.permute.xlu0 %4303  ;;  %v2170_v33 = vsel %vm571_vm6, %v2169_v48, %v4310_v28  ;;  %v2509_v48 = vsel %vm567_vm4, %v2508_v5, %v4276_v25 }
 0x28e   : > { %v3567_v59 = vsel %vm3559_vm7, %v2170_v33, %v3557_v63  ;;  %v4305_v39 = vunpack.i.l.bf16 %v4304_v32  ;;  %v4306_v16 = vunpack.i.h.bf16 %v4304_v32  ;;  %v4311_v63 = vunpack.i.h.bf16 %v6470_v43 }
 0x28f   : > { %v6525_v3 = vpop.permute.xlu1 %4348  ;;  %v3906_v9 = vpack.c.bf16 %v3567_v59, %v3566_v8  ;;  %v4321_v33 = vunpack.i.h.bf16 %v6488_v61  ;;  %v4286_v8 = vunpack.i.h.bf16 %v6496_v37  ;;  %v4330_v59 = vunpack.i.l.bf16 %v6506_v2 }
 0x290   : > { %v2734_v12 = vsel %vm565_vm3, %v2733_v50, %v4305_v39  ;;  %v2393_v22 = vsel %vm565_vm3, %v2392_v56, %v4306_v16  ;;  %v2510_v6 = vsel %vm569_vm5, %v2509_v48, %v4296_v7  ;;  %v4350_v41 = vunpack.i.l.bf16 %v6525_v3 }
 0x291   : > { %v6527_v51 = vpop.permute.xlu0 %4313  ;;  %3907 = vmatpush3.bf16.msra.mxu0 %v3906_v9  ;;  %v2735_v57 = vsel %vm567_vm4, %v2734_v12, %v4320_v35  ;;  %v2394_v37 = vsel %vm567_vm4, %v2393_v22, %v4321_v33  ;;  %v2511_v21 = vsel %vm571_vm6, %v2510_v6, %v4311_v63  ;;  %v4351_v54 = vunpack.i.h.bf16 %v6525_v3 }
 0x292   : > { %3908 = vmatprep.subr.bf16.mxu0 %v6827_v55  ;;  %v4315_v29 = vunpack.i.l.bf16 %v6527_v51  ;;  %v3569_v52 = vrot.slane %v2511_v21, 4  ;;  %v4316_v40 = vunpack.i.h.bf16 %v6527_v51  ;;  %v4331_v63 = vunpack.i.h.bf16 %v6506_v2 }
 0x293   : > { %v6532_v46 = vpop.permute.xlu1 %4358 }
 0x294   : > { %v2614_v61 = vsel %vm563_vm2, %v2613_v1, %v4315_v29  ;;  %v4360_v7 = vunpack.i.l.bf16 %v6532_v46  ;;  %v4361_v51 = vunpack.i.h.bf16 %v6532_v46 }
 0x295   : > { %v6535_v15 = vpop.permute.xlu0 %4323  ;;  %v2615_v39 = vsel %vm565_vm3, %v2614_v61, %v4330_v59 }
 0x296   : > { %v4325_v43 = vunpack.i.l.bf16 %v6535_v15  ;;  %v4326_v4 = vunpack.i.h.bf16 %v6535_v15  ;;  %v2953_v15 = vsel %vm559_vm0, %v6066_v38, %v4286_v8 }
 0x297   : > { %v6543_v0 = vpop.permute.xlu1 %4368 }
 0x298   : > { %v3187_v62 = vsel %vm559_vm0, %v6179_v31, %v4325_v43  ;;  %v2846_v25 = vsel %vm559_vm0, %v6182_v30, %v4326_v4  ;;  %v4341_v31 = vunpack.i.h.bf16 %v6518_v11  ;;  %v2954_v11 = vsel %vm561_vm1, %v2953_v15, %v4301_v45 }
 0x299   : > { %v4334_v20 = vpop.permute.xlu0 %4333  ;;  %v3188_v5 = vsel %vm561_vm1, %v3187_v62, %v4340_v17  ;;  %v2955_v48 = vsel %vm563_vm2, %v2954_v11, %v4316_v40 }
 0x29a   : > { %v4335_v28 = vunpack.i.l.bf16 %v4334_v20  ;;  %v4336_v32 = vunpack.i.h.bf16 %v4334_v20  ;;  %v2847_v35 = vsel %vm561_vm1, %v2846_v25, %v4341_v31  ;;  %v3189_v29 = vsel %vm563_vm2, %v3188_v5, %v4360_v7 }
 0x29b   : > { %v6555_v36 = vpop.permute.xlu1 %4378 }
 0x29c   : > { %v2736_v58 = vsel %vm569_vm5, %v2735_v57, %v4335_v28  ;;  %v2395_v27 = vsel %vm569_vm5, %v2394_v37, %v4336_v32  ;;  %v4380_v20 = vunpack.i.l.bf16 %v6555_v36  ;;  %v2848_v57 = vsel %vm563_vm2, %v2847_v35, %v4361_v51 }
 0x29d   : > { %v6562_v18 = vpop.permute.xlu0 %4343  ;;  %v2737_v44 = vsel %vm571_vm6, %v2736_v58, %v4350_v41  ;;  %v2396_v53 = vsel %vm571_vm6, %v2395_v27, %v4351_v54  ;;  %v4370_v58 = vunpack.i.l.bf16 %v6543_v0  ;;  %v2956_v41 = vsel %vm565_vm3, %v2955_v48, %v4331_v63 }
 0x29e   : > { %v4345_v47 = vunpack.i.l.bf16 %v6562_v18  ;;  %v3572_v49 = vrot.slane %v2737_v44, 4  ;;  %v3583_v28 = vsel %vm3559_vm7, %v2396_v53, %v3569_v52  ;;  %v4346_v33 = vunpack.i.h.bf16 %v6562_v18 }
 0x29f   : > { %v6572_v23 = vpop.permute.xlu1 %4388  ;;  %v4381_v18 = vunpack.i.h.bf16 %v6555_v36 }
 0x2a0   : > { %v2616_v3 = vsel %vm567_vm4, %v2615_v39, %v4345_v47  ;;  %v4390_v8 = vunpack.i.l.bf16 %v6572_v23  ;;  %v4391_v1 = vunpack.i.h.bf16 %v6572_v23  ;;  %v2957_v47 = vsel %vm567_vm4, %v2956_v41, %v4346_v33 }
 0x2a1   : > { %v6581_v9 = vpop.permute.xlu0 %4353 }
 0x2a2   : > { %v4355_v59 = vunpack.i.l.bf16 %v6581_v9 }
 0x2a3   : > { %v6591_v10 = vpop.permute.xlu1 %4398 }
 0x2a4   : > { %v4400_v61 = vunpack.i.l.bf16 %v6591_v10  ;;  %v3072_v4 = vsel %vm559_vm0, %v6235_v13, %v4355_v59  ;;  %v4401_v23 = vunpack.i.h.bf16 %v6591_v10 }
 0x2a5   : > { %v4364_v26 = vpop.permute.xlu0 %4363  ;;  %v3073_v45 = vsel %vm561_vm1, %v3072_v4, %v4370_v58 }
 0x2a6   : > { %v4365_v19 = vunpack.i.l.bf16 %v4364_v26  ;;  %v4366_v46 = vunpack.i.h.bf16 %v4364_v26 }
 0x2a7   : > { %v4409_v38 = vpop.permute.xlu1 %4408 }
 0x2a8   : > { %v2617_v16 = vsel %vm569_vm5, %v2616_v3, %v4365_v19  ;;  %v2958_v54 = vsel %vm569_vm5, %v2957_v47, %v4366_v46  ;;  %v4411_v26 = vunpack.i.h.bf16 %v4409_v38  ;;  %v4356_v3 = vunpack.i.h.bf16 %v6581_v9 }
 0x2a9   : > { %v4374_v50 = vpop.permute.xlu0 %4373  ;;  %v2618_v24 = vsel %vm571_vm6, %v2617_v16, %v4380_v20  ;;  %v4410_v20 = vunpack.i.l.bf16 %v4409_v38  ;;  %v2959_v13 = vsel %vm571_vm6, %v2958_v54, %v4381_v18 }
 0x2aa   : > { %v4375_v12 = vunpack.i.l.bf16 %v4374_v50  ;;  %v3584_v30 = vsel %vm3559_vm7, %v2618_v24, %v3572_v49  ;;  %v4376_v34 = vunpack.i.h.bf16 %v4374_v50  ;;  %v3575_v31 = vrot.slane %v2959_v13, 4 }
 0x2ab   : > { %v3909_v56 = vpack.c.bf16 %v3584_v30, %v3583_v28  ;;  %v6631_v2 = vpop.permute.xlu1 %4418  ;;  %v3413_v24 = vsel %vm559_vm0, %v6238_v42, %v4356_v3  ;;  %v4371_v28 = vunpack.i.h.bf16 %v6543_v0  ;;  %v3588_v3 = vld [vmem:[%s6833_s8] sm:$0xff] }
 0x2ac   : > { %v3190_v22 = vsel %vm565_vm3, %v3189_v29, %v4375_v12  ;;  %v2849_v6 = vsel %vm565_vm3, %v2848_v57, %v4376_v34  ;;  %v4420_v53 = vunpack.i.l.bf16 %v6631_v2 }
 0x2ad   : > { %v4384_v32 = vpop.permute.xlu0 %4383  ;;  %3910 = vmatpush3.bf16.msra.mxu0 %v3909_v56  ;;  %v3191_v43 = vsel %vm567_vm4, %v3190_v22, %v4390_v8  ;;  %v2850_v27 = vsel %vm567_vm4, %v2849_v6, %v4391_v1  ;;  %v3414_v11 = vsel %vm561_vm1, %v3413_v24, %v4371_v28  ;;  %v4421_v6 = vunpack.i.h.bf16 %v6631_v2 }
 0x2ae   : > { %3911 = vmatprep.subr.bf16.mxu0 %v6827_v55  ;;  %v4385_v21 = vunpack.i.l.bf16 %v4384_v32  ;;  %v3192_v44 = vsel %vm569_vm5, %v3191_v43, %v4400_v61  ;;  %v2851_v19 = vsel %vm569_vm5, %v2850_v27, %v4401_v23  ;;  %v4386_v9 = vunpack.i.h.bf16 %v4384_v32 }
 0x2af   : > { %v4429_v62 = vpop.permute.xlu1 %4428  ;;  %v3193_v10 = vsel %vm571_vm6, %v3192_v44, %v4410_v20  ;;  %v2852_v16 = vsel %vm571_vm6, %v2851_v19, %v4411_v26 }
 0x2b0   : > { %v3074_v15 = vsel %vm563_vm2, %v3073_v45, %v4385_v21  ;;  %v4430_v25 = vunpack.i.l.bf16 %v4429_v62  ;;  %v3578_v38 = vrot.slane %v3193_v10, 4  ;;  %v3585_v7 = vsel %vm3559_vm7, %v2852_v16, %v3575_v31 }
 0x2b1   : > { %v4394_v37 = vpop.permute.xlu0 %4393  ;;  %v3415_v63 = vsel %vm563_vm2, %v3414_v11, %v4386_v9 }
 0x2b2   : > { %v4395_v36 = vunpack.i.l.bf16 %v4394_v37  ;;  %v4396_v30 = vunpack.i.h.bf16 %v4394_v37  ;;  %v4431_v37 = vunpack.i.h.bf16 %v4429_v62 }
 0x2b3   : > { %v4439_v32 = vpop.permute.xlu1 %4438 }
 0x2b4   : > { %v3075_v52 = vsel %vm565_vm3, %v3074_v15, %v4395_v36  ;;  %v3416_v22 = vsel %vm565_vm3, %v3415_v63, %v4396_v30  ;;  %v4441_v18 = vunpack.i.h.bf16 %v4439_v32  ;;  %v4440_v41 = vunpack.i.l.bf16 %v4439_v32 }
 0x2b5   : > { %v4404_v39 = vpop.permute.xlu0 %4403 }
 0x2b6   : > { %v4405_v17 = vunpack.i.l.bf16 %v4404_v39  ;;  %v4406_v34 = vunpack.i.h.bf16 %v4404_v39 }
 0x2b7   : > { %v4449_v47 = vpop.permute.xlu1 %4448 }
 0x2b8   : > { %v3076_v49 = vsel %vm567_vm4, %v3075_v52, %v4405_v17  ;;  %v3417_v0 = vsel %vm567_vm4, %v3416_v22, %v4406_v34  ;;  %v4451_v44 = vunpack.i.h.bf16 %v4449_v47  ;;  %v4450_v36 = vunpack.i.l.bf16 %v4449_v47 }
 0x2b9   : > { %v3077_v40 = vsel %vm569_vm5, %v3076_v49, %v4420_v53  ;;  %v4414_v5 = vpop.permute.xlu0 %4413  ;;  %v3418_v61 = vsel %vm569_vm5, %v3417_v0, %v4421_v6 }
 0x2ba   : > { %v3078_v50 = vsel %vm571_vm6, %v3077_v40, %v4430_v25  ;;  %v4416_v51 = vunpack.i.h.bf16 %v4414_v5  ;;  %v4415_v29 = vunpack.i.l.bf16 %v4414_v5  ;;  %v3419_v21 = vsel %vm571_vm6, %v3418_v61, %v4431_v37 }
 0x2bb   : > { %v3586_v12 = vsel %vm3559_vm7, %v3078_v50, %v3578_v38  ;;  %v3581_v62 = vrot.slane %v3419_v21, 4 }
 0x2bc   : > { %v3912_v35 = vpack.c.bf16 %v3586_v12, %v3585_v7  ;;  %v3528_v8 = vsel %vm559_vm0, %v6316_v60, %v4416_v51  ;;  %v3294_v59 = vsel %vm559_vm0, %v6313_v14, %v4415_v29 }
 0x2bd   : > { %v4424_v56 = vpop.permute.xlu0 %4423 }
 0x2be   : > { %3913 = vmatpush3.bf16.msra.mxu0 %v3912_v35  ;;  %v4426_v48 = vunpack.i.h.bf16 %v4424_v56  ;;  %v4425_v42 = vunpack.i.l.bf16 %v4424_v56 }
 0x2bf   : > { %3914 = vmatprep.subr.bf16.mxu0 %v6827_v55 }
 0x2c0   : > { %v3295_v1 = vsel %vm561_vm1, %v3294_v59, %v4425_v42  ;;  %v3529_v55 = vsel %vm561_vm1, %v3528_v8, %v4426_v48 }
 0x2c1   : > { %v4434_v33 = vpop.permute.xlu0 %4433 }
 0x2c2   : > { %v4436_v57 = vunpack.i.h.bf16 %v4434_v33  ;;  %v4435_v46 = vunpack.i.l.bf16 %v4434_v33 }
 0x2c4   : > { %v3296_v43 = vsel %vm563_vm2, %v3295_v1, %v4435_v46  ;;  %v3530_v58 = vsel %vm563_vm2, %v3529_v55, %v4436_v57 }
 0x2c5   : > { %v4444_v60 = vpop.permute.xlu0 %4443  ;;  %v3297_v27 = vsel %vm565_vm3, %v3296_v43, %v4440_v41  ;;  %v3531_v2 = vsel %vm565_vm3, %v3530_v58, %v4441_v18 }
 0x2c6   : > { %v4446_v14 = vunpack.i.h.bf16 %v4444_v60  ;;  %v4445_v4 = vunpack.i.l.bf16 %v4444_v60 }
 0x2c8   : > { %v3298_v23 = vsel %vm567_vm4, %v3297_v27, %v4445_v4  ;;  %v3532_v54 = vsel %vm567_vm4, %v3531_v2, %v4446_v14 }
 0x2c9   : > { %v4454_v20 = vpop.permute.xlu0 %4453  ;;  %v3299_v39 = vsel %vm569_vm5, %v3298_v23, %v4450_v36  ;;  %v3533_v19 = vsel %vm569_vm5, %v3532_v54, %v4451_v44 }
 0x2ca   : > { %v4456_v26 = vunpack.i.h.bf16 %v4454_v20  ;;  %v4455_v45 = vunpack.i.l.bf16 %v4454_v20 }
 0x2cc   : > { %v3300_v13 = vsel %vm571_vm6, %v3299_v39, %v4455_v45  ;;  %v3534_v15 = vsel %vm571_vm6, %v3533_v19, %v4456_v26 }
 0x2cd   : > { %v3587_v17 = vsel %vm3559_vm7, %v3300_v13, %v3581_v62 }
 0x2ce   : > { %v3915_v10 = vpack.c.bf16 %v3534_v15, %v3587_v17 }
 0x2d0   : > { %3917 = vmatpush3.bf16.msk.msra.mxu0 %vm3916_vm10, %v3915_v10 }
 0x2d3   : > { %3894 = vmatmul.mubr.msk.f32.vlgmr.msra.gmra.mrb[0].mxu0 %vm3589_vm11, %v3588_v3 }
 0x3a6   : > { %v3662_v53 = vpop.f32.mrb[0].mxu0 }
 0x3a7   : > { %3667 = vst.msk [vmem:[%s456_s14] sm:$0xff] %vm3666_vm12, %v3662_v53  ;;  %v3895_v52 = vpop.f32.mrb[1].mxu0 }
 0x3a8   : > { %4474 = shalt.err (!%p4471_p13)
}
 0x3a9   : > { %s4475_s28 = scalar_lea.hbm %s6698_s7, 128  ;;  %s4479_s6 = scalar_lea.hbm %s6834_s0, 1024 }
 0x3aa   : > { %p4476_p4 = scmp.ne.s32.totalorder %s6698_s7, %s4475_s28  ;;  %p4480_p2 = scmp.lt.u32.totalorder %s6698_s7, %s6834_s0 }
 0x3ab   : > { %p4481_p3 = scmp.lt.u32.totalorder %s4479_s6, %s4475_s28  ;;  %p4483_p8 = scmp.lt.u32.totalorder %s4475_s28, %s6698_s7 }
 0x3ac   : > { %p4477_p6 = pnand %p4476_p4, %p4753_p0 }
 0x3ad   : > { %p4482_p7 = por %p4481_p3, %p4480_p2 }
 0x3ae   : > { %p4478_p1 = pneg %p4477_p6 }
 0x3af   : > { %p4484_p9 = por %p4483_p8, %p4482_p7 }
 0x3b1   : > { %p4485_p10 = pnand %p4484_p9, %p4478_p1 }
 0x3b3   : > { %4488 = shalt.err (!%p4485_p10)
}
 0x3b4   : > { %3919 = dma.vmem_to_hbm [thread:$0]  (%p4753_p0), %s6700_s29, 128, %s6698_s7, %s3669_s16  }
 0x3b5 PF: > { %p3925_p11 = scmp.ge.s32.totalorder %s4587_s26, 2  ;;  %s3696_s14 = sand.u32 1, %s4543_s15  }
 0x3b6   : > { %s3697_s11 = scalar_lea.sflag [#allocation6], %s3696_s14 }
 0x3b7   : > { %p3922_p12 = pnand %p3925_p11, %p4759_p5 }
 0x3b9   : > { %4538 = dma.done.wait (!%p3922_p12), %s3697_s11, 128  }
 0x3ba   : > { %4540 = vsyncadd (!%p3922_p12), %s3697_s11, 4294967168  ;;  %s17_s26 = sadd.s32 1, %s4587_s26   ;;  %s6835_s5 = sld [smem:[#allocation11_spill]] }
 0x3bb   : > { %p14_p13 = scmp.ge.s32.totalorder %s17_s26, 10   ;;  %s6836_s29 = sld [smem:[#allocation10_spill]] }
 0x3bc   : > { %s6837_s7 = sld [smem:[#allocation8_spill]]  ;;  %s6838_s4 = sld [smem:[#allocation9_spill]] }
 0x3bd   : > { %s6839_s15 = smov %s4563_s20  ;;  %s6840_s16 = smov %s4551_s17 }
 0x3be   : > { %s6841_s17 = smov %s4742_s10  ;;  %s6842_s18 = smov %s4559_s19 }
 0x3bf   : > { %s6844_s20 = smov %s4567_s21  ;;  %s6846_s22 = smov %s4579_s24 }
 0x3c0   : > { %s6843_s19 = smov %s6835_s5  ;;  %s6847_s23 = smov %s4583_s25 }
 0x3c1   : > { %s6845_s21 = smov %s6836_s29  ;;  %16 = sbr.rel (!%p14_p13) target bundleno = 10 (0xa), region = 206 }
 0x3c2   : > { %s6848_s24 = smov %s6837_s7  ;;  %s6849_s25 = smov %s6838_s4 }
 0x3c8   :  { %3702 = vsyncpa [#allocation6], 1 }
 0x3c9   :  { %3704 = vsyncpa [#allocation6 + $0x1], 1 }

</bundles_post_ra>
